<compile_context>
chip_gen: v6e
topology: v6e:2x2x1
jax: 0.10.0
libtpu: 0.0.40
codegen_flags: <defaults>
</compile_context>

<pallas_src>
import functools

import jax
import jax.numpy as jnp
from jax.experimental import pallas as pl
from jax.experimental.pallas import tpu as pltpu


def _round_up(x, m):
    return ((x + m - 1) // m) * m


# Accounted working-set cap + scoped VMEM limits (safe on v7x's 64 MiB VMEM;
# conservative but still in the large-tile regime on v5e/v6e's 128 MiB).
_STAGE1_VMEM_BUDGET = 36 * 1024 * 1024
_STAGE1_VMEM_LIMIT = 48 * 1024 * 1024
_STAGE2_VMEM_LIMIT = 32 * 1024 * 1024


def _stage1_vmem_bytes(bt, tl, d_in, p2, rp):
    x_in = 2 * bt * tl * d_in * 2            # bf16 x tile, double buffered
    p_in = 2 * bt * tl * p2 * 2              # bf16 pos tile, double buffered
    wts = 2 * ((d_in + p2) * 3 * rp * 2 + rp * rp * 2 + 4 * rp * 4)
    y_tmp = (5 * bt * tl * 3 * rp * 4) // 2  # f32 y temp + shifted-slice copies
    scr = 5 * bt * rp * 4                    # scratch + resident output
    return x_in + p_in + wts + y_tmp + scr


def _choose_stage1_tiles(B, L, d_in, p2, rp):
    if B <= 8:
        bt = 8
    else:
        # >=2 B tiles so the parallel B axis shards across v7x's 2 TensorCores.
        bt = min(16, _round_up((B + 1) // 2, 8))
    lp8 = _round_up(L, 8)
    cands = ([lp8] if lp8 <= 512 else [])
    cands += [t for t in (512, 256, 128, 64, 32, 16, 8) if t <= lp8]
    for tl in cands:
        if _stage1_vmem_bytes(bt, tl, d_in, p2, rp) <= _STAGE1_VMEM_BUDGET:
            return bt, tl
    return bt, 8


# ---------------------------------------------------------------- stage 1 ---
def feat_kernel(x_ref, pos_ref, wx_ref, wp_ref, cb_ref, lw_ref, lb_ref,
                feat_ref, m_sc, c0_sc, c1_sc, *, T):
    # x_ref  : (BT, TL, Din)  bf16 seq tile          wx_ref: (Din, 3Rp) bf16
    # pos_ref: (BT, TL, 2P)   bf16 pos-emb tile      wp_ref: (2P, 3Rp)  bf16
    # cb_ref : (1, Rp) f32    lw_ref: (Rp, Rp) bf16  lb_ref: (1, Rp) f32
    # feat_ref: (BT, Rp) f32  per-B-tile ConvNet output (written at last L tile)
    # m_sc   : (BT, Rp) f32   running max over time
    # c0/c1  : (BT, Rp) f32   partial sums of the 2 windows straddling L tiles
    # T      : number of valid conv windows (= seq_len - 2), static
    l = pl.program_id(1)
    n_l = pl.num_programs(1)
    BT, TL, Din = x_ref.shape
    P2 = pos_ref.shape[2]
    Rp = cb_ref.shape[1]

    @pl.when(l == 0)
    def _init():
        m_sc[...] = jnp.full(m_sc.shape, -jnp.inf, m_sc.dtype)

    # All three conv taps in a single MXU matmul per input stream (bf16 in,
    # f32 accumulate); seq and pos contributions summed in-kernel.
    x = x_ref[...].reshape(BT * TL, Din)
    p = pos_ref[...].reshape(BT * TL, P2)
    y = (jnp.dot(x, wx_ref[...], preferred_element_type=jnp.float32)
         + jnp.dot(p, wp_ref[...], preferred_element_type=jnp.float32))
    y = y.reshape(BT, TL, 3 * Rp)

    # Conv windows that straddled the previous / current L tiles.
    # NOTE: carry correctness relies on the grid iterating b-outer / l-inner
    # with the l axis marked "arbitrary" and scratch being per-core.
    @pl.when(l > 0)
    def _cross():
        t0 = l * TL - 2
        t1 = l * TL - 1
        w0 = c0_sc[...] + y[:, 0, 2 * Rp:3 * Rp]
        w1 = c1_sc[...] + y[:, 0, Rp:2 * Rp] + y[:, 1, 2 * Rp:3 * Rp]
        w0 = jnp.where(t0 < T, w0, -jnp.inf)      # scalar predicate, cheap
        w1 = jnp.where(t1 < T, w1, -jnp.inf)
        m_sc[...] = jnp.maximum(m_sc[...], jnp.maximum(w0, w1))

    # Windows fully inside this tile (start s in [0, TL-3]).  Lane slices are
    # whole-vreg (Rp multiples of 128).
    conv_in = (y[:, 0:TL - 2, 0:Rp]
               + y[:, 1:TL - 1, Rp:2 * Rp]
               + y[:, 2:TL, 2 * Rp:3 * Rp])                     # (BT, TL-2, Rp)

    # Inner tiles never contain invalid windows -> no masking work there.
    @pl.when(l < n_l - 1)
    def _inner():
        m_sc[...] = jnp.maximum(m_sc[...], jnp.max(conv_in, axis=1))

    @pl.when(l == n_l - 1)
    def _inner_last():
        t_glob = l * TL + jax.lax.broadcasted_iota(jnp.int32, (BT, TL - 2, Rp), 1)
        masked = jnp.where(t_glob < T, conv_in, -jnp.inf)
        m_sc[...] = jnp.maximum(m_sc[...], jnp.max(masked, axis=1))

    # Carries for the next L tile.
    c0_sc[...] = y[:, TL - 2, 0:Rp] + y[:, TL - 1, Rp:2 * Rp]
    c1_sc[...] = y[:, TL - 1, 0:Rp]

    @pl.when(l == n_l - 1)
    def _finalize():
        # Conv bias is time-invariant -> adding it after the max is identical.
        pooled = jnp.maximum(m_sc[...] + cb_ref[...], 0.0)      # max_pool + relu
        feat_ref[...] = jax.nn.sigmoid(
            jnp.dot(pooled.astype(lw_ref.dtype), lw_ref[...],
                    preferred_element_type=jnp.float32) + lb_ref[...])


# ---------------------------------------------------------------- stage 2 ---
def pair_kernel(pw_ref, pb_ref, fi_ref, fjT_ref, out_ref, *, R):
    # pw_ref: (R,) f32 in SMEM   pb_ref: (1,) f32 in SMEM
    # fi_ref: (TI, Rp) f32       fjT_ref: (Rp, TJ) f32
    # out_ref: (TI, TJ) f32 lane-dense tile of pairwise probabilities
    fi = fi_ref[...]
    fjT = fjT_ref[...]
    TI = fi.shape[0]
    TJ = fjT.shape[1]
    acc = jnp.zeros((TI, TJ), jnp.float32)
    # Per-r accumulation (static unroll): no (TI, R, TJ) 3-D temp, live set
    # stays in a handful of vregs.
    for r in range(R):
        col = fi[:, r:r + 1]                     # (TI, 1) -> lane broadcast
        row = fjT[r:r + 1, :]                    # (1, TJ) -> sublane broadcast
        acc = acc + jnp.abs(col - row) * pw_ref[r]
    out_ref[...] = jax.nn.sigmoid(acc + pb_ref[0])


# ---------------------------------------------------------------- wrapper ---
def rsn_layer_forward(head_spans, tail_spans, seq_output, params, max_len,
                      *, b_tile=None, l_tile=None):
    """JAX wrapper reproducing RSNLayer.forward (use_cnn=True, eval mode)."""
    B, L, Din = seq_output.shape
    assert L >= 3, "Conv1d(kernel_size=3) needs seq_len >= 3"
    P = params["pos_emb"].shape[1]
    P2 = 2 * P
    R = params["lin_w"].shape[0]
    Rp = _round_up(R, 128)

    # TODO(synk): the data-dependent pos-emb gather stays in the XLA wrapper;
    # it could be folded in via scalar-prefetch index maps.  It is tiny
    # (2*P channels) compared with the seq_output stream.
    idx = jnp.arange(L, dtype=jnp.int32)[None, :]
    pos_h = jnp.clip(idx - head_spans[:, 0:1] + max_len, 0, 2 * max_len - 1)
    pos_t = jnp.clip(idx - tail_spans[:, 0:1] + max_len, 0, 2 * max_len - 1)
    pos_cat = jnp.concatenate(
        [params["pos_emb"][pos_h], params["pos_emb"][pos_t]], axis=2)

    # Tile selection (VMEM-budgeted).
    bt_auto, tl_auto = _choose_stage1_tiles(B, L, Din, P2, Rp)
    BT = _round_up(b_tile, 8) if b_tile is not None else bt_auto
    TL = _round_up(l_tile, 8) if l_tile is not None else tl_auto
    Bp = _round_up(B, BT)
    Lp = _round_up(L, TL)

    # bf16 inputs halve the HBM bytes of the dominant x stream; MXU accumulates
    # in f32.  No (B, L, C) concat pass over the big activation.
    x_pad = jnp.pad(seq_output.astype(jnp.bfloat16),
                    ((0, Bp - B), (0, Lp - L), (0, 0)))
    pos_pad = jnp.pad(pos_cat.astype(jnp.bfloat16),
                      ((0, Bp - B), (0, Lp - L), (0, 0)))

    # Fused conv taps [w0 | w1 | w2], lane-padded to Rp, split seq / pos parts.
    cw = params["conv_w"]                                      # (R, Din+2P, 3)

    def fuse(part):                                            # (R, Cp, 3) -> (Cp, 3Rp)
        taps = [jnp.pad(part[:, :, k].T, ((0, 0), (0, Rp - R))) for k in range(3)]
        return jnp.concatenate(taps, axis=1)

    wx = fuse(cw[:, :Din, :]).astype(jnp.bfloat16)
    wp = fuse(cw[:, Din:, :]).astype(jnp.bfloat16)
    cb = jnp.pad(params["conv_b"], (0, Rp - R)).reshape(1, Rp).astype(jnp.float32)
    lw = jnp.pad(params["lin_w"].T, ((0, Rp - R), (0, Rp - R))).astype(jnp.bfloat16)
    lb = jnp.pad(params["lin_b"], (0, Rp - R)).reshape(1, Rp).astype(jnp.float32)

    # --- stage 1: feature kernel, grid (B tiles, L tiles) ---
    feat = pl.pallas_call(
        functools.partial(feat_kernel, T=L - 2),
        out_shape=jax.ShapeDtypeStruct((Bp, Rp), jnp.float32),
        grid=(Bp // BT, Lp // TL),
        in_specs=[
            pl.BlockSpec((BT, TL, Din), lambda b, l: (b, l, 0)),
            pl.BlockSpec((BT, TL, P2), lambda b, l: (b, l, 0)),
            pl.BlockSpec((Din, 3 * Rp), lambda b, l: (0, 0)),
            pl.BlockSpec((P2, 3 * Rp), lambda b, l: (0, 0)),
            pl.BlockSpec((1, Rp), lambda b, l: (0, 0)),
            pl.BlockSpec((Rp, Rp), lambda b, l: (0, 0)),
            pl.BlockSpec((1, Rp), lambda b, l: (0, 0)),
        ],
        out_specs=pl.BlockSpec((BT, Rp), lambda b, l: (b, 0)),
        scratch_shapes=[pltpu.VMEM((BT, Rp), jnp.float32)] * 3,
        compiler_params=pltpu.CompilerParams(
            dimension_semantics=("parallel", "arbitrary"),
            vmem_limit_bytes=_STAGE1_VMEM_LIMIT),
    )(x_pad, pos_pad, wx, wp, cb, lw, lb)

    # --- stage 2: pairwise kernel, lane-dense 128x128 output tiles ---
    pw_smem = params["p_w"].reshape(-1).astype(jnp.float32)    # (R,)
    pb_smem = params["p_b"].reshape(-1).astype(jnp.float32)    # (1,)

    Bq = _round_up(max(Bp, 128), 128)
    feat_q = jnp.pad(feat, ((0, Bq - Bp), (0, 0)))
    feat_qT = feat_q.T                                         # (Rp, Bq)
    TI = TJ = 128

    pair = pl.pallas_call(
        functools.partial(pair_kernel, R=R),
        out_shape=jax.ShapeDtypeStruct((Bq, Bq), jnp.float32),
        grid=(Bq // TI, Bq // TJ),
        in_specs=[
            pl.BlockSpec(memory_space=pltpu.MemorySpace.SMEM),  # p weights
            pl.BlockSpec(memory_space=pltpu.MemorySpace.SMEM),  # p bias
            pl.BlockSpec((TI, Rp), lambda i, j: (i, 0)),
            pl.BlockSpec((Rp, TJ), lambda i, j: (0, j)),
        ],
        out_specs=pl.BlockSpec((TI, TJ), lambda i, j: (i, j)),
        compiler_params=pltpu.CompilerParams(
            dimension_semantics=("parallel", "parallel"),
            vmem_limit_bytes=_STAGE2_VMEM_LIMIT),
    )(pw_smem, pb_smem, feat_q, feat_qT)
    return pair[:B, :B]


# ---------------------------------------------------------------- helpers ---
def rsn_reference(head_spans, tail_spans, seq_output, params, max_len):
    """Pure-JAX reference mirroring the PyTorch module (eval mode)."""
    B, L, _ = seq_output.shape
    idx = jnp.arange(L, dtype=jnp.int32)[None, :]
    pos_h = jnp.clip(idx - head_spans[:, 0:1] + max_len, 0, 2 * max_len - 1)
    pos_t = jnp.clip(idx - tail_spans[:, 0:1] + max_len, 0, 2 * max_len - 1)
    x = jnp.concatenate(
        [seq_output, params["pos_emb"][pos_h], params["pos_emb"][pos_t]], axis=2)
    cw = params["conv_w"]
    conv = (jnp.einsum("blc,rc->blr", x[:, :-2, :], cw[:, :, 0])
            + jnp.einsum("blc,rc->blr", x[:, 1:-1, :], cw[:, :, 1])
            + jnp.einsum("blc,rc->blr", x[:, 2:, :], cw[:, :, 2])
            + params["conv_b"])
    pooled = jnp.maximum(jnp.max(conv, axis=1), 0.0)
    feat = jax.nn.sigmoid(pooled @ params["lin_w"].T + params["lin_b"])
    dis = jnp.abs(feat[:, None, :] - feat[None, :, :])
    return jax.nn.sigmoid(jnp.einsum("ijr,r->ij", dis, params["p_w"][0])
                          + params["p_b"][0])


def init_params(key, input_dim, rel_dim, max_len=300, pos_emb_dim=5):
    """Deterministic synthetic parameters matching RSNLayer.__init__ shapes."""
    c_in = input_dim + 2 * pos_emb_dim
    ks = jax.random.split(key, 7)
    scale = 0.1
    return {
        "pos_emb": scale * jax.random.normal(ks[0], (max_len * 2, pos_emb_dim), jnp.float32),
        "conv_w": scale * jax.random.normal(ks[1], (rel_dim, c_in, 3), jnp.float32),
        "conv_b": scale * jax.random.normal(ks[2], (rel_dim,), jnp.float32),
        "lin_w": scale * jax.random.normal(ks[3], (rel_dim, rel_dim), jnp.float32),
        "lin_b": scale * jax.random.normal(ks[4], (rel_dim,), jnp.float32),
        "p_w": scale * jax.random.normal(ks[5], (1, rel_dim), jnp.float32),
        "p_b": scale * jax.random.normal(ks[6], (1,), jnp.float32),
    }


if __name__ == "__main__":
    B, L, input_dim, rel_dim = 12, 20, 32, 32
    max_len, pos_emb_dim = 300, 5

    key = jax.random.PRNGKey(0)
    k_par, k_seq, k_h, k_t = jax.random.split(key, 4)
    params = init_params(k_par, input_dim, rel_dim, max_len, pos_emb_dim)

    seq_output = jax.random.normal(k_seq, (B, L, input_dim), jnp.float32)
    head_spans = jax.random.randint(k_h, (B, 2), 0, L, dtype=jnp.int32)
    tail_spans = jax.random.randint(k_t, (B, 2), 0, L, dtype=jnp.int32)

    ref = rsn_reference(head_spans, tail_spans, seq_output, params, max_len)

    # Auto-chosen tiles (single L tile at this size).
    out_auto = rsn_layer_forward(head_spans, tail_spans, seq_output, params,
                                 max_len)
    jax.block_until_ready(out_auto)
    assert out_auto.shape == (B, B)
    assert bool(jnp.all(jnp.isfinite(out_auto)))
    assert bool(jnp.allclose(out_auto, ref, atol=2e-2, rtol=0.0)), (
        "auto tiles: max |diff| = %g" % float(jnp.max(jnp.abs(out_auto - ref))))

    # Forced small tiles: exercises multiple B tiles and the cross-L-tile
    # conv-window carry + last-tile masking paths.
    out_tiled = rsn_layer_forward(head_spans, tail_spans, seq_output, params,
                                  max_len, b_tile=8, l_tile=16)
    jax.block_until_ready(out_tiled)
    assert bool(jnp.allclose(out_tiled, ref, atol=2e-2, rtol=0.0)), (
        "small tiles: max |diff| = %g" % float(jnp.max(jnp.abs(out_tiled - ref))))

    print("KERNEL_OK")
</pallas_src>

<mosaic_0001>
module attributes {stable_mosaic.version = 11 : i64} {
  func.func @feat_kernel(%arg0: i32, %arg1: i32, %arg2: memref<8x24x32xbf16, #tpu.memory_space<vmem>>, %arg3: memref<8x24x10xbf16, #tpu.memory_space<vmem>>, %arg4: memref<32x384xbf16, #tpu.memory_space<vmem>>, %arg5: memref<10x384xbf16, #tpu.memory_space<vmem>>, %arg6: memref<1x128xf32, #tpu.memory_space<vmem>>, %arg7: memref<128x128xbf16, #tpu.memory_space<vmem>>, %arg8: memref<1x128xf32, #tpu.memory_space<vmem>>, %arg9: memref<8x128xf32, #tpu.memory_space<vmem>>, %arg10: memref<8x128xf32, #tpu.memory_space<vmem>>, %arg11: memref<8x128xf32, #tpu.memory_space<vmem>>, %arg12: memref<8x128xf32, #tpu.memory_space<vmem>>) attributes {dimension_semantics = [#tpu.dimension_semantics<parallel>, #tpu.dimension_semantics<arbitrary>], iteration_bounds = array<i64: 2, 1>, scalar_prefetch = 0 : i64, scratch_operands = 3 : i64, tpu.core_type = #tpu.core_type<tc>, window_params = [{transform_indices = @transform_0, window_bounds = array<i64: 8, 24, 32>}, {transform_indices = @transform_1, window_bounds = array<i64: 8, 24, 10>}, {pipeline_mode = #tpu.pipeline_mode<synchronous>, transform_indices = @transform_2, window_bounds = array<i64: 32, 384>}, {pipeline_mode = #tpu.pipeline_mode<synchronous>, transform_indices = @transform_3, window_bounds = array<i64: 10, 384>}, {pipeline_mode = #tpu.pipeline_mode<synchronous>, transform_indices = @transform_4, window_bounds = array<i64: 1, 128>}, {pipeline_mode = #tpu.pipeline_mode<synchronous>, transform_indices = @transform_5, window_bounds = array<i64: 128, 128>}, {pipeline_mode = #tpu.pipeline_mode<synchronous>, transform_indices = @transform_6, window_bounds = array<i64: 1, 128>}, {transform_indices = @transform_7, window_bounds = array<i64: 8, 128>}]} {
    %c0_i32 = arith.constant 0 : i32
    %0 = arith.cmpi eq, %arg1, %c0_i32 : i32
    %1 = arith.extui %0 : i1 to i32
    %c0_i32_0 = arith.constant 0 : i32
    %2 = arith.cmpi ne, %1, %c0_i32_0 : i32
    scf.if %2 {
      %cst_23 = arith.constant 0xFF800000 : f32
      %39 = vector.broadcast %cst_23 : f32 to vector<8x128xf32>
      %c0_24 = arith.constant 0 : index
      %c0_25 = arith.constant 0 : index
      %40 = vector.load %arg10[%c0_24, %c0_25] : memref<8x128xf32, #tpu.memory_space<vmem>>, vector<8x128xf32>
      tpu.vector_store %arg10[%c0_24, %c0_25], %39 {strides = array<i32>} : memref<8x128xf32, #tpu.memory_space<vmem>>, vector<8x128xf32>,
    } else {
    }
    %c0 = arith.constant 0 : index
    %c0_1 = arith.constant 0 : index
    %c0_2 = arith.constant 0 : index
    %3 = vector.load %arg2[%c0, %c0_1, %c0_2] : memref<8x24x32xbf16, #tpu.memory_space<vmem>>, vector<8x24x32xbf16>
    %4 = vector.shape_cast %3 : vector<8x24x32xbf16> to vector<192x32xbf16>
    %c0_3 = arith.constant 0 : index
    %c0_4 = arith.constant 0 : index
    %c0_5 = arith.constant 0 : index
    %5 = vector.load %arg3[%c0_3, %c0_4, %c0_5] : memref<8x24x10xbf16, #tpu.memory_space<vmem>>, vector<8x24x10xbf16>
    %6 = vector.shape_cast %5 : vector<8x24x10xbf16> to vector<192x10xbf16>
    %c0_6 = arith.constant 0 : index
    %c0_7 = arith.constant 0 : index
    %7 = vector.load %arg4[%c0_6, %c0_7] : memref<32x384xbf16, #tpu.memory_space<vmem>>, vector<32x384xbf16>
    %cst = arith.constant dense<0.000000e+00> : vector<192x384xf32>
    %8 = tpu.matmul %4, %7, %cst {dimension_numbers = #tpu.dot_dimension_numbers<[1], [0], [0], [1], [0, 0, 1, 1], [], []>} : vector<192x32xbf16>, vector<32x384xbf16>, vector<192x384xf32> -> vector<192x384xf32>
    %c0_8 = arith.constant 0 : index
    %c0_9 = arith.constant 0 : index
    %9 = vector.load %arg5[%c0_8, %c0_9] : memref<10x384xbf16, #tpu.memory_space<vmem>>, vector<10x384xbf16>
    %cst_10 = arith.constant dense<0.000000e+00> : vector<192x384xf32>
    %10 = tpu.matmul %6, %9, %cst_10 {dimension_numbers = #tpu.dot_dimension_numbers<[1], [0], [0], [1], [0, 0, 1, 1], [], []>} : vector<192x10xbf16>, vector<10x384xbf16>, vector<192x384xf32> -> vector<192x384xf32>
    %11 = arith.addf %8, %10 : vector<192x384xf32>
    %12 = vector.shape_cast %11 : vector<192x384xf32> to vector<8x24x384xf32>
    %c0_i32_11 = arith.constant 0 : i32
    %13 = arith.cmpi sgt, %arg1, %c0_i32_11 : i32
    %14 = arith.extui %13 : i1 to i32
    %c0_i32_12 = arith.constant 0 : i32
    %15 = arith.cmpi ne, %14, %c0_i32_12 : i32
    scf.if %15 {
      %c24_i32 = arith.constant 24 : i32
      %39 = arith.muli %arg1, %c24_i32 : i32
      %c2_i32 = arith.constant 2 : i32
      %40 = arith.subi %39, %c2_i32 : i32
      %c24_i32_23 = arith.constant 24 : i32
      %41 = arith.muli %arg1, %c24_i32_23 : i32
      %c1_i32 = arith.constant 1 : i32
      %42 = arith.subi %41, %c1_i32 : i32
      %c0_24 = arith.constant 0 : index
      %c0_25 = arith.constant 0 : index
      %43 = vector.load %arg11[%c0_24, %c0_25] : memref<8x128xf32, #tpu.memory_space<vmem>>, vector<8x128xf32>
      %44 = vector.extract_strided_slice %12 {offsets = [0, 0, 256], sizes = [8, 1, 128], strides = [1, 1, 1]} : vector<8x24x384xf32> to vector<8x1x128xf32>
      %45 = vector.shape_cast %44 : vector<8x1x128xf32> to vector<8x128xf32>
      %46 = arith.addf %43, %45 : vector<8x128xf32>
      %c0_26 = arith.constant 0 : index
      %c0_27 = arith.constant 0 : index
      %47 = vector.load %arg12[%c0_26, %c0_27] : memref<8x128xf32, #tpu.memory_space<vmem>>, vector<8x128xf32>
      %48 = vector.extract_strided_slice %12 {offsets = [0, 0, 128], sizes = [8, 1, 128], strides = [1, 1, 1]} : vector<8x24x384xf32> to vector<8x1x128xf32>
      %49 = vector.shape_cast %48 : vector<8x1x128xf32> to vector<8x128xf32>
      %50 = arith.addf %47, %49 : vector<8x128xf32>
      %51 = vector.extract_strided_slice %12 {offsets = [0, 1, 256], sizes = [8, 1, 128], strides = [1, 1, 1]} : vector<8x24x384xf32> to vector<8x1x128xf32>
      %52 = vector.shape_cast %51 : vector<8x1x128xf32> to vector<8x128xf32>
      %53 = arith.addf %50, %52 : vector<8x128xf32>
      %c18_i32 = arith.constant 18 : i32
      %54 = arith.cmpi slt, %40, %c18_i32 : i32
      %cst_28 = arith.constant 0xFF800000 : f32
      %55 = vector.broadcast %cst_28 : f32 to vector<8x128xf32>
      %56 = arith.select %54, %46, %55 : vector<8x128xf32>
      %c18_i32_29 = arith.constant 18 : i32
      %57 = arith.cmpi slt, %42, %c18_i32_29 : i32
      %cst_30 = arith.constant 0xFF800000 : f32
      %58 = vector.broadcast %cst_30 : f32 to vector<8x128xf32>
      %59 = arith.select %57, %53, %58 : vector<8x128xf32>
      %c0_31 = arith.constant 0 : index
      %c0_32 = arith.constant 0 : index
      %60 = vector.load %arg10[%c0_31, %c0_32] : memref<8x128xf32, #tpu.memory_space<vmem>>, vector<8x128xf32>
      %61 = arith.maximumf %56, %59 : vector<8x128xf32>
      %62 = arith.maximumf %60, %61 : vector<8x128xf32>
      %c0_33 = arith.constant 0 : index
      %c0_34 = arith.constant 0 : index
      %63 = vector.load %arg10[%c0_33, %c0_34] : memref<8x128xf32, #tpu.memory_space<vmem>>, vector<8x128xf32>
      tpu.vector_store %arg10[%c0_33, %c0_34], %62 {strides = array<i32>} : memref<8x128xf32, #tpu.memory_space<vmem>>, vector<8x128xf32>,
    } else {
    }
    %16 = vector.extract_strided_slice %12 {offsets = [0, 0, 0], sizes = [8, 22, 128], strides = [1, 1, 1]} : vector<8x24x384xf32> to vector<8x22x128xf32>
    %17 = vector.extract_strided_slice %12 {offsets = [0, 1, 128], sizes = [8, 22, 128], strides = [1, 1, 1]} : vector<8x24x384xf32> to vector<8x22x128xf32>
    %18 = arith.addf %16, %17 : vector<8x22x128xf32>
    %19 = vector.extract_strided_slice %12 {offsets = [0, 2, 256], sizes = [8, 22, 128], strides = [1, 1, 1]} : vector<8x24x384xf32> to vector<8x22x128xf32>
    %20 = arith.addf %18, %19 : vector<8x22x128xf32>
    %c0_i32_13 = arith.constant 0 : i32
    %21 = arith.cmpi slt, %arg1, %c0_i32_13 : i32
    %22 = arith.extui %21 : i1 to i32
    %c0_i32_14 = arith.constant 0 : i32
    %23 = arith.cmpi ne, %22, %c0_i32_14 : i32
    scf.if %23 {
      %c0_23 = arith.constant 0 : index
      %c0_24 = arith.constant 0 : index
      %39 = vector.load %arg10[%c0_23, %c0_24] : memref<8x128xf32, #tpu.memory_space<vmem>>, vector<8x128xf32>
      %cst_25 = arith.constant dense<0xFF800000> : vector<8x128xf32>
      %40 = vector.multi_reduction <maximumf>, %20, %cst_25 [1] : vector<8x22x128xf32> to vector<8x128xf32>
      %41 = arith.maximumf %39, %40 : vector<8x128xf32>
      %c0_26 = arith.constant 0 : index
      %c0_27 = arith.constant 0 : index
      %42 = vector.load %arg10[%c0_26, %c0_27] : memref<8x128xf32, #tpu.memory_space<vmem>>, vector<8x128xf32>
      tpu.vector_store %arg10[%c0_26, %c0_27], %41 {strides = array<i32>} : memref<8x128xf32, #tpu.memory_space<vmem>>, vector<8x128xf32>,
    } else {
    }
    %c0_i32_15 = arith.constant 0 : i32
    %24 = arith.cmpi eq, %arg1, %c0_i32_15 : i32
    %25 = arith.extui %24 : i1 to i32
    %c0_i32_16 = arith.constant 0 : i32
    %26 = arith.cmpi ne, %25, %c0_i32_16 : i32
    scf.if %26 {
      %c24_i32 = arith.constant 24 : i32
      %39 = arith.muli %arg1, %c24_i32 : i32
      %40 = tpu.iota {dimensions = array<i32: 1>} : vector<8x22x128xi32>
      %41 = vector.broadcast %39 : i32 to vector<8x22x128xi32>
      %42 = arith.addi %41, %40 : vector<8x22x128xi32>
      %c18_i32 = arith.constant 18 : i32
      %43 = vector.broadcast %c18_i32 : i32 to vector<8x22x128xi32>
      %44 = arith.cmpi slt, %42, %43 : vector<8x22x128xi32>
      %cst_23 = arith.constant 0xFF800000 : f32
      %45 = vector.broadcast %cst_23 : f32 to vector<8x22x128xf32>
      %46 = arith.select %44, %20, %45 : vector<8x22x128xi1>, vector<8x22x128xf32>
      %c0_24 = arith.constant 0 : index
      %c0_25 = arith.constant 0 : index
      %47 = vector.load %arg10[%c0_24, %c0_25] : memref<8x128xf32, #tpu.memory_space<vmem>>, vector<8x128xf32>
      %cst_26 = arith.constant dense<0xFF800000> : vector<8x128xf32>
      %48 = vector.multi_reduction <maximumf>, %46, %cst_26 [1] : vector<8x22x128xf32> to vector<8x128xf32>
      %49 = arith.maximumf %47, %48 : vector<8x128xf32>
      %c0_27 = arith.constant 0 : index
      %c0_28 = arith.constant 0 : index
      %50 = vector.load %arg10[%c0_27, %c0_28] : memref<8x128xf32, #tpu.memory_space<vmem>>, vector<8x128xf32>
      tpu.vector_store %arg10[%c0_27, %c0_28], %49 {strides = array<i32>} : memref<8x128xf32, #tpu.memory_space<vmem>>, vector<8x128xf32>,
    } else {
    }
    %27 = vector.extract_strided_slice %12 {offsets = [0, 22, 0], sizes = [8, 1, 128], strides = [1, 1, 1]} : vector<8x24x384xf32> to vector<8x1x128xf32>
    %28 = vector.shape_cast %27 : vector<8x1x128xf32> to vector<8x128xf32>
    %29 = vector.extract_strided_slice %12 {offsets = [0, 23, 128], sizes = [8, 1, 128], strides = [1, 1, 1]} : vector<8x24x384xf32> to vector<8x1x128xf32>
    %30 = vector.shape_cast %29 : vector<8x1x128xf32> to vector<8x128xf32>
    %31 = arith.addf %28, %30 : vector<8x128xf32>
    %c0_17 = arith.constant 0 : index
    %c0_18 = arith.constant 0 : index
    %32 = vector.load %arg11[%c0_17, %c0_18] : memref<8x128xf32, #tpu.memory_space<vmem>>, vector<8x128xf32>
    tpu.vector_store %arg11[%c0_17, %c0_18], %31 {strides = array<i32>} : memref<8x128xf32, #tpu.memory_space<vmem>>, vector<8x128xf32>,
    %33 = vector.extract_strided_slice %12 {offsets = [0, 23, 0], sizes = [8, 1, 128], strides = [1, 1, 1]} : vector<8x24x384xf32> to vector<8x1x128xf32>
    %34 = vector.shape_cast %33 : vector<8x1x128xf32> to vector<8x128xf32>
    %c0_19 = arith.constant 0 : index
    %c0_20 = arith.constant 0 : index
    %35 = vector.load %arg12[%c0_19, %c0_20] : memref<8x128xf32, #tpu.memory_space<vmem>>, vector<8x128xf32>
    tpu.vector_store %arg12[%c0_19, %c0_20], %34 {strides = array<i32>} : memref<8x128xf32, #tpu.memory_space<vmem>>, vector<8x128xf32>,
    %c0_i32_21 = arith.constant 0 : i32
    %36 = arith.cmpi eq, %arg1, %c0_i32_21 : i32
    %37 = arith.extui %36 : i1 to i32
    %c0_i32_22 = arith.constant 0 : i32
    %38 = arith.cmpi ne, %37, %c0_i32_22 : i32
    scf.if %38 {
      %c0_23 = arith.constant 0 : index
      %c0_24 = arith.constant 0 : index
      %39 = vector.load %arg10[%c0_23, %c0_24] : memref<8x128xf32, #tpu.memory_space<vmem>>, vector<8x128xf32>
      %c0_25 = arith.constant 0 : index
      %c0_26 = arith.constant 0 : index
      %40 = vector.load %arg6[%c0_25, %c0_26] : memref<1x128xf32, #tpu.memory_space<vmem>>, vector<1x128xf32>
      %41 = vector.broadcast %40 : vector<1x128xf32> to vector<8x128xf32>
      %42 = arith.addf %39, %41 : vector<8x128xf32>
      %cst_27 = arith.constant 0.000000e+00 : f32
      %43 = vector.broadcast %cst_27 : f32 to vector<8x128xf32>
      %44 = arith.maximumf %42, %43 : vector<8x128xf32>
      %45 = arith.truncf %44 : vector<8x128xf32> to vector<8x128xbf16>
      %c0_28 = arith.constant 0 : index
      %c0_29 = arith.constant 0 : index
      %46 = vector.load %arg7[%c0_28, %c0_29] : memref<128x128xbf16, #tpu.memory_space<vmem>>, vector<128x128xbf16>
      %cst_30 = arith.constant dense<0.000000e+00> : vector<8x128xf32>
      %47 = tpu.matmul %45, %46, %cst_30 {dimension_numbers = #tpu.dot_dimension_numbers<[1], [0], [0], [1], [0, 0, 1, 1], [], []>} : vector<8x128xbf16>, vector<128x128xbf16>, vector<8x128xf32> -> vector<8x128xf32>
      %c0_31 = arith.constant 0 : index
      %c0_32 = arith.constant 0 : index
      %48 = vector.load %arg8[%c0_31, %c0_32] : memref<1x128xf32, #tpu.memory_space<vmem>>, vector<1x128xf32>
      %49 = vector.broadcast %48 : vector<1x128xf32> to vector<8x128xf32>
      %50 = arith.addf %47, %49 : vector<8x128xf32>
      %51 = arith.negf %50 : vector<8x128xf32>
      %52 = math.exp %51 : vector<8x128xf32>
      %cst_33 = arith.constant 1.000000e+00 : f32
      %53 = vector.broadcast %cst_33 : f32 to vector<8x128xf32>
      %54 = arith.addf %53, %52 : vector<8x128xf32>
      %55 = arith.divf %53, %54 : vector<8x128xf32>
      %c0_34 = arith.constant 0 : index
      %c0_35 = arith.constant 0 : index
      %56 = vector.load %arg9[%c0_34, %c0_35] : memref<8x128xf32, #tpu.memory_space<vmem>>, vector<8x128xf32>
      tpu.vector_store %arg9[%c0_34, %c0_35], %55 {strides = array<i32>} : memref<8x128xf32, #tpu.memory_space<vmem>>, vector<8x128xf32>,
    } else {
    }
    return
  }
  func.func @transform_0(%arg0: i32, %arg1: i32) -> (i32, i32, i32) {
    %c0_i32 = arith.constant 0 : i32
    %c0_i32_0 = arith.constant 0 : i32
    return %arg0, %arg1, %c0_i32 : i32, i32, i32
  }
  func.func @transform_1(%arg0: i32, %arg1: i32) -> (i32, i32, i32) {
    %c0_i32 = arith.constant 0 : i32
    %c0_i32_0 = arith.constant 0 : i32
    return %arg0, %arg1, %c0_i32 : i32, i32, i32
  }
  func.func @transform_2(%arg0: i32, %arg1: i32) -> (i32, i32) {
    %c0_i32 = arith.constant 0 : i32
    %c0_i32_0 = arith.constant 0 : i32
    %c0_i32_1 = arith.constant 0 : i32
    return %c0_i32, %c0_i32_0 : i32, i32
  }
  func.func @transform_3(%arg0: i32, %arg1: i32) -> (i32, i32) {
    %c0_i32 = arith.constant 0 : i32
    %c0_i32_0 = arith.constant 0 : i32
    %c0_i32_1 = arith.constant 0 : i32
    return %c0_i32, %c0_i32_0 : i32, i32
  }
  func.func @transform_4(%arg0: i32, %arg1: i32) -> (i32, i32) {
    %c0_i32 = arith.constant 0 : i32
    %c0_i32_0 = arith.constant 0 : i32
    %c0_i32_1 = arith.constant 0 : i32
    return %c0_i32, %c0_i32_0 : i32, i32
  }
  func.func @transform_5(%arg0: i32, %arg1: i32) -> (i32, i32) {
    %c0_i32 = arith.constant 0 : i32
    %c0_i32_0 = arith.constant 0 : i32
    %c0_i32_1 = arith.constant 0 : i32
    return %c0_i32, %c0_i32_0 : i32, i32
  }
  func.func @transform_6(%arg0: i32, %arg1: i32) -> (i32, i32) {
    %c0_i32 = arith.constant 0 : i32
    %c0_i32_0 = arith.constant 0 : i32
    %c0_i32_1 = arith.constant 0 : i32
    return %c0_i32, %c0_i32_0 : i32, i32
  }
  func.func @transform_7(%arg0: i32, %arg1: i32) -> (i32, i32) {
    %c0_i32 = arith.constant 0 : i32
    %c0_i32_0 = arith.constant 0 : i32
    return %arg0, %c0_i32 : i32, i32
  }
}

</mosaic_0001>

<bundles_post_ra>
// kernel: tpu_custom_call.1
= control target key start
LH: loop header
LB: loop body
LE: loop exit
PB: predicated region body
PF: predicated region fallthrough
CT: control target
= control target key end

     0   :  { %12 = vsyncpa [#allocation6], 0  ;;  %s3297_s0 = inlined_call_operand.vmem [shape: bf16[16,24,32], index: 0, kind: input, shape index: {}]   ;;  %s3298_s1 = inlined_call_operand.vmem [shape: bf16[16,24,10], index: 1, kind: input, shape index: {}]   ;;  %s3299_s2 = inlined_call_operand.hbm [shape: bf16[32,384], index: 2, kind: input, shape index: {}]   ;;  %s3300_s3 = inlined_call_operand.hbm [shape: bf16[10,384], index: 3, kind: input, shape index: {}]   ;;  %s3301_s4 = inlined_call_operand.vmem [shape: f32[1,128], index: 4, kind: input, shape index: {}]   ;;  %s3302_s5 = inlined_call_operand.vmem [shape: bf16[128,128], index: 5, kind: input, shape index: {}]   ;;  %s3303_s6 = inlined_call_operand.vmem [shape: f32[1,128], index: 6, kind: input, shape index: {}]   ;;  %s3304_s7 = inlined_call_operand.hbm [shape: f32[16,128], index: 7, kind: output, shape index: {}]  }
   0x1   :  { %13 = vsyncpa [#allocation9], 0 }
   0x2   :  { %14 = vsyncpa [#allocation7], 0 }
   0x3   :  { %16 = vsyncpa [#allocation7 + $0x1], 0  ;;  %s2673_s24 = smov 0   ;;  %s2675_s25 = smov 0  }
   0x4   :  { %s2677_s26 = smov 0   ;;  %s2679_s27 = smov 0  }
   0x5   :  { %s2681_s28 = smov 0   ;;  %s2683_s29 = smov 0  }
   0x6 LB: > { %s2135_s30 = sadd.s32 4294967295, %s2623_s29   ;;  %s2136_s8 = sadd.s32 4294967294, %s2623_s29   ;;  %s2623_s29 = sphi %s2683_s29, %s22_s29   ;;  %s2619_s28 = sphi %s2681_s28, %s3349_s28   ;;  %s2615_s27 = sphi %s2679_s27, %s3348_s27   ;;  %s2611_s26 = sphi %s2677_s26, %s3347_s26   ;;  %s2607_s25 = sphi %s2675_s25, %s3346_s25   ;;  %s2603_s24 = sphi %s2673_s24, %s3345_s24  }
   0x7   : > { %s34_s9 = sadd.s32 1, %s2619_s28  ;;  %s202_s10 = sadd.s32 1, %s2611_s26 }
   0x8   : > { %p36_p0 = scmp.ge.s32.totalorder %s34_s9, 2  ;;  %p212_p1 = scmp.ne.s32.totalorder %s2611_s26, %s2607_s25 }
   0x9   : > { %p213_p2 = scmp.eq.s32.totalorder %s2135_s30, 1  ;;  %p218_p3 = scmp.ne.s32.totalorder %s2607_s25, %s2603_s24 }
   0xa   : > { %s3351_s9 = smov (%p36_p0, %s34_s9), 0  ;;  %p219_p5 = scmp.eq.s32.totalorder %s2136_s8, 1 }
   0xb   : > { %p2713_p4 = por %p213_p2, %p212_p1  ;;  %s199_s12 = ssub.s32 %s2619_s28, %s3351_s9 }
   0xc   : > { %p2137_p6 = scmp.ge.s32.totalorder %s2623_s29, 1  ;;  %p200_p7 = scmp.eq.s32.totalorder %s199_s12, 0 }
   0xd   : > { %s3306_s11 = scalar_select %p2713_p4, 1, 0 }
   0xe   : > { %p2720_p8 = por %p219_p5, %p218_p3  ;;  %p226_p9 = scmp.lt.s32.totalorder %s2623_s29, 3 }
   0xf   : > { %s2726_s14 = scalar_select %p200_p7, %s2611_s26, %s202_s10  }
  0x10   : > { %s3307_s13 = scalar_select %p2720_p8, 1, 0 }
  0x11   : > { %p2728_p10 = pnand %p2137_p6, %p226_p9  ;;  %p2732_p11 = scmp.eq.s32.totalorder %s2135_s30, 0 }
  0x12   : > { %s2625_s17 = smov [#allocation5]   ;;  %s2626_s20 = smov [#allocation8]  }
  0x13   : > { %p2368_p12 = pneg %p2728_p10  ;;  %s238_s18 = sshll.u32 %s2625_s17, 4  ;;  %s239_s18 = int_to_ptr.vmem [resolvable:$true] %s238_s18 }
  0x14   : > { %s251_s21 = sshll.u32 %s2626_s20, 4  ;;  %s2498_s22 = scalar_lea.vmem %s239_s18, 768  ;;  %s252_s21 = int_to_ptr.vmem [resolvable:$true] %s251_s21 }
  0x15   : > { %p2740_p13 = pnand %p2732_p11, %p2368_p12  ;;  %p2499_p1 = scmp.ne.s32.totalorder %s239_s18, %s2498_s22 }
  0x16   : > { %p2506_p5 = scmp.lt.s32.totalorder %s239_s18, %s239_s18  ;;  %p2507_p6 = scmp.lt.s32.totalorder %s2498_s22, %s2498_s22 }
  0x17   : > { %p2489_p0 = pneg %p2740_p13 }
  0x18   : > { %p2508_p7 = por %p2507_p6, %p2506_p5 }
  0x19   : > { %p2501_p2 = pnand %p2499_p1, %p2489_p0 }
  0x1b   : > { %p2502_p3 = pneg %p2501_p2 }
  0x1d   : > { %p2509_p9 = pnand %p2508_p7, %p2502_p3 }
  0x1f   : > { %2512 = shalt.err (!%p2509_p9)
}
  0x20   : > { %s2627_s23 = smov 192   ;;  %s2628_s30 = smov 12  }
  0x21   : > { %2371 = dma.hbm_to_vmem [thread:$0]  (!%p2740_p13), %s3299_s2, 768, %s239_s18, [#allocation6], %s2627_s23, %s2627_s23, %s2628_s30  }
  0x22   : > { %s2524_s12 = scalar_lea.vmem %s252_s21, 384  ;;  %p2532_p8 = scmp.lt.s32.totalorder %s252_s21, %s252_s21 }
  0x23   : > { %p2525_p12 = scmp.ne.s32.totalorder %s252_s21, %s2524_s12  ;;  %p2533_p4 = scmp.lt.s32.totalorder %s2524_s12, %s2524_s12 }
  0x25   : > { %p2527_p1 = pnand %p2525_p12, %p2489_p0  ;;  %p2534_p5 = por %p2533_p4, %p2532_p8 }
  0x27   : > { %p2528_p2 = pneg %p2527_p1 }
  0x29   : > { %p2535_p3 = pnand %p2534_p5, %p2528_p2 }
  0x2b   : > { %2538 = shalt.err (!%p2535_p3)
}
  0x2c   : > { %2374 = dma.hbm_to_vmem [thread:$0]  (!%p2740_p13), %s3300_s3, 384, %s252_s21, [#allocation9], %s2627_s23, %s2627_s23, %s2628_s30  }
  0x2d   : > { %306 = sbr.rel (%p2728_p10) target bundleno = 674 (0x2a2), region = 48 }
  0x32   : > { %2590 = dma.done.wait (%p2732_p11), [#allocation6], 768  }
  0x33   : > { %2592 = vsyncadd (%p2732_p11), [#allocation6], 4294966528 }
  0x34   : > { %2594 = dma.done.wait (%p2732_p11), [#allocation9], 384  }
  0x35   : > { %2596 = vsyncadd (%p2732_p11), [#allocation9], 4294966912  ;;  %s2145_s18 = sshll.u32 %s2615_s27, 3  ;;  %v2629_v0 = vmov 0   ;;  %vm557_vm0 = vcmask 1044480   ;;  %vm520_vm1 = vcmask 80896  }
  0x36   : > { %599 = vmatprep.mubr.bf16.mxu0 %v2629_v0  ;;  %p359_p4 = scmp.lt.s32.totalorder %s2145_s18, 15  ;;  %v2439_v1 = vld [vmem:[#allocation8 + $0x4] ss:$12 sps:$4 sm:$0x1f]   ;;  %v2445_v8 = vld [vmem:[#allocation5 + $0x18] ss:$12 sps:$4 sm:$0xff]  }
  0x37   : > { %2164 = vmatprep.subr.msk.bf16.mxu0 %vm557_vm0, %v2439_v1  ;;  %v2441_v2 = vld [vmem:[#allocation8 + $0x8] ss:$12 sps:$4 sm:$0x1f]   ;;  %v2442_v3 = vld [vmem:[#allocation8] ss:$12 sps:$4 sm:$0x1f]  }
  0x38   : > { %s3353_s18 = smov (!%p359_p4, %s2145_s18), 15  ;;  %2356 = vmatprep.subr.msk.bf16.mxu1 %vm557_vm0, %v2441_v2  ;;  %v559_v5 = vsel %vm557_vm0, %v2442_v3, 0  ;;  %v565_v6 = vsel %vm557_vm0, %v2441_v2, 0  ;;  %v2447_v9 = vld [vmem:[#allocation5 + $0x1c] ss:$12 sps:$4 sm:$0xff]   ;;  %vm941_vm2 = vcmask 261120  }
  0x39   : > { %s2357_s15 = smul.u32 12, %s3353_s18  ;;  %582 = vmatpush1.bf16.msra.mxu0 %v559_v5  ;;  %2283 = vmatpush3.bf16.msra.mxu1 %v565_v6  ;;  %v2448_v10 = vld [vmem:[#allocation5 + $0x20] ss:$12 sps:$4 sm:$0xff]   ;;  %v2457_v14 = vld [vmem:[#allocation5 + $0x4] ss:$12 sps:$4 sm:$0xff]   ;;  %v2630_v60 = vmov 0.0  }
  0x3a   : > { %990 = vmatprep.subr.bf16.mxu1 %v2447_v9  ;;  %2308 = vmatprep.subr.bf16.mxu0 %v2448_v10  ;;  %v2455_v15 = vld [vmem:[#allocation5] ss:$12 sps:$4 sm:$0xff]   ;;  %v2463_v17 = vld [vmem:[#allocation5 + $0x8] ss:$12 sps:$4 sm:$0xff]   ;;  %v2475_v61 = vld [vmem:[%s3302_s5 + $0x38] sm:$0xff]   ;;  %vm2631_vm3 = vmmov 0  }
  0x3b   : > { %s2782_s22 = scalar_lea.vmem %s3298_s1, %s2357_s15  ;;  %s2801_s30 = scalar_lea.vmem %s3297_s0, %s2357_s15  ;;  %v2476_v2 = vld [vmem:[%s3302_s5 + $0x30] sm:$0xff]   ;;  %v2477_v9 = vld [vmem:[%s3302_s5 + $0x28] sm:$0xff]   ;;  %vm1378_vm4 = vcmask 1046528   ;;  %vm1814_vm5 = vcmask 1047559   ;;  %vm1802_vm6 = vcmask 1041409   ;;  %vm1804_vm7 = vcmask 1042434  }
  0x3c   : > { %v2443_v4 = vld [vmem:[%s2782_s22] sm:$0xff]   ;;  %v2444_v7 = vld [vmem:[%s2782_s22 + $0x8] sm:$0xff]   ;;  %v2449_v11 = vld [vmem:[%s2782_s22 + $0x10] sm:$0xff]   ;;  %vm1491_vm9 = vcmask 1045504   ;;  %vm1806_vm10 = vcmask 1043459   ;;  %vm1808_vm11 = vcmask 1044484  }
  0x3d   : > { %2284 = vmatprep.mubr.msk.bf16.mxu1 %vm520_vm1, %v2443_v4  ;;  %2165 = vmatmul.mubr.msk.bf16.vlgmr.msra.gmra.mxu0 %vm520_vm1, %v2443_v4  ;;  %v2450_v12 = vld [vmem:[%s2782_s22 + $0x18] sm:$0xff]   ;;  %v2451_v13 = vld [vmem:[%s2782_s22 + $0x20] sm:$0xff]   ;;  %v2452_v16 = vld [vmem:[%s2782_s22 + $0x28] sm:$0xff]   ;;  %vm1810_vm12 = vcmask 1045509   ;;  %vm1812_vm13 = vcmask 1046534   ;;  %s354_s19 = sand.u32 1, %s2607_s25  }
  0x3e   : > { %2285 = vmatmul.mubr.msk.bf16.vlgmr.msra.gmra.mxu1 %vm520_vm1, %v2444_v7  ;;  %2309 = vmatpush3.bf16.msra.mxu0 %v2448_v10  ;;  %v2453_v18 = vld [vmem:[%s2782_s22 + $0x30] sm:$0xff]   ;;  %v2454_v19 = vld [vmem:[%s2782_s22 + $0x38] sm:$0xff]   ;;  %v2458_v20 = vld [vmem:[%s2782_s22 + $0x40] sm:$0xff]   ;;  %s2144_s21 = sshll.u32 %s354_s19, 3  ;;  %s2009_s12 = scalar_lea.sflag [#allocation7], %s354_s19 }
  0x3f   : > { %991 = vmatpush1.bf16.msra.mxu1 %v2445_v8  ;;  %609 = vmatprep.mubr.bf16.mxu0 %v2629_v0  ;;  %v2459_v21 = vld [vmem:[%s2782_s22 + $0x48] sm:$0xff]   ;;  %v2460_v22 = vld [vmem:[%s2782_s22 + $0x50] sm:$0xff]   ;;  %v2461_v23 = vld [vmem:[%s2782_s22 + $0x58] sm:$0xff]   ;;  %s2243_s22 = sshll.u32 %s2615_s27, 7  ;;  %s356_s16 = scalar_lea.vmem [#allocation10], %s2144_s21 }
  0x40   : > { %2288 = vmatprep.mubr.msk.bf16.mxu1 %vm520_vm1, %v2449_v11  ;;  %992 = vmatprep.subr.bf16.mxu1 %v2457_v14  ;;  %v2462_v24 = vld [vmem:[%s2801_s30] sm:$0xff]   ;;  %v2464_v25 = vld [vmem:[%s2801_s30 + $0x8] sm:$0xff]   ;;  %v2465_v26 = vld [vmem:[%s2801_s30 + $0x10] sm:$0xff]   ;;  %s2022_s23 = sshll.u32 %s356_s16, 4  ;;  %s3257_s10 = scalar_lea.hbm %s3304_s7, %s2243_s22  ;;  %s2023_s23 = int_to_ptr.vmem [resolvable:$true] %s2022_s23 }
  0x41   : > { %2310 = vmatprep.subr.bf16.mxu0 %v2463_v17  ;;  %v2466_v27 = vld [vmem:[%s2801_s30 + $0x18] sm:$0xff]   ;;  %v2467_v28 = vld [vmem:[%s2801_s30 + $0x20] sm:$0xff]   ;;  %v2468_v29 = vld [vmem:[%s2801_s30 + $0x28] sm:$0xff]   ;;  %s2539_s17 = scalar_lea.vmem %s2023_s23, 128  ;;  %p3343_p10 = scmp.ne.s32.totalorder %s3306_s11, 0 }
  0x42   : > { %2311 = vmatpush3.bf16.msra.mxu0 %v2463_v17  ;;  %v2469_v30 = vld [vmem:[%s2801_s30 + $0x30] sm:$0xff]   ;;  %v2470_v31 = vld [vmem:[%s2801_s30 + $0x38] sm:$0xff]   ;;  %v2471_v32 = vld [vmem:[%s2801_s30 + $0x40] sm:$0xff]   ;;  %p2540_p8 = scmp.ne.s32.totalorder %s2023_s23, %s2539_s17  ;;  %s2632_s20 = smov [#allocation10]  }
  0x43   : > { %993 = vmatpush1.bf16.msra.mxu1 %v2455_v15  ;;  %v2472_v33 = vld [vmem:[%s2801_s30 + $0x48] sm:$0xff]   ;;  %v2473_v34 = vld [vmem:[%s2801_s30 + $0x50] sm:$0xff]   ;;  %v2474_v35 = vld [vmem:[%s2801_s30 + $0x58] sm:$0xff]   ;;  %2336 = vmatprep.subr.bf16.mxu0 %v2630_v60  ;;  %s2543_s18 = sshll.u32 %s2632_s20, 4  ;;  %s2544_s18 = int_to_ptr.vmem [resolvable:$false] %s2543_s18 }
  0x44   : > { %v2478_v14 = vld [vmem:[%s3302_s5 + $0x20] sm:$0xff]   ;;  %p2541_p11 = pnand %p2540_p8, %p3343_p10  ;;  %s2545_s27 = scalar_lea.vmem %s2544_s18, 256 }
  0x45   : > { %2166 = vmatmul.mubr.msk.bf16.gmra.mxu0 %vm520_vm1, %v2444_v7  ;;  %p2546_p0 = scmp.lt.s32.totalorder %s2023_s23, %s2544_s18  ;;  %p2547_p6 = scmp.lt.s32.totalorder %s2545_s27, %s2539_s17 }
  0x46   : > { %2289 = vmatmul.mubr.msk.bf16.gmra.mxu1 %vm520_vm1, %v2450_v12  ;;  %619 = vmatprep.mubr.bf16.mxu0 %v2629_v0  ;;  %p2542_p13 = pneg %p2541_p11 }
  0x47   : > { %2292 = vmatprep.mubr.msk.bf16.mxu1 %vm520_vm1, %v2451_v13  ;;  %p2548_p7 = por %p2547_p6, %p2546_p0 }
  0x49   : > { %p2549_p9 = pnand %p2548_p7, %p2542_p13 }
  0x4d   : > { %2167 = vmatmul.mubr.msk.bf16.gmra.mxu0 %vm520_vm1, %v2449_v11 }
  0x4e   : > { %2293 = vmatmul.mubr.msk.bf16.gmra.mxu1 %vm520_vm1, %v2452_v16  ;;  %629 = vmatprep.mubr.bf16.mxu0 %v2629_v0 }
  0x4f   : > { %2296 = vmatprep.mubr.msk.bf16.mxu1 %vm520_vm1, %v2453_v18 }
  0x55   : > { %2168 = vmatmul.mubr.msk.bf16.gmra.mxu0 %vm520_vm1, %v2450_v12 }
  0x56   : > { %2297 = vmatmul.mubr.msk.bf16.gmra.mxu1 %vm520_vm1, %v2454_v19  ;;  %639 = vmatprep.mubr.bf16.mxu0 %v2629_v0 }
  0x57   : > { %2300 = vmatprep.mubr.msk.bf16.mxu1 %vm520_vm1, %v2458_v20 }
  0x5d   : > { %2169 = vmatmul.mubr.msk.bf16.gmra.mxu0 %vm520_vm1, %v2451_v13 }
  0x5e   : > { %2301 = vmatmul.mubr.msk.bf16.gmra.mxu1 %vm520_vm1, %v2459_v21  ;;  %649 = vmatprep.mubr.bf16.mxu0 %v2629_v0 }
  0x5f   : > { %2304 = vmatprep.mubr.msk.bf16.mxu1 %vm520_vm1, %v2460_v22 }
  0x65   : > { %2170 = vmatmul.mubr.msk.bf16.gmra.mxu0 %vm520_vm1, %v2452_v16 }
  0x66   : > { %2305 = vmatmul.mubr.msk.bf16.gmra.mxu1 %vm520_vm1, %v2461_v23  ;;  %659 = vmatprep.mubr.bf16.mxu0 %v2629_v0 }
  0x67   : > { %1010 = vmatprep.mubr.bf16.mxu1 %v2629_v0 }
  0x6d   : > { %2171 = vmatmul.mubr.msk.bf16.gmra.mxu0 %vm520_vm1, %v2453_v18 }
  0x6e   : > { %2207 = vmatmul.mubr.msk.bf16.vlgmr.msra.gmra.mxu1 %vm941_vm2, %v2462_v24  ;;  %669 = vmatprep.mubr.bf16.mxu0 %v2629_v0 }
  0x6f   : > { %1020 = vmatprep.mubr.bf16.mxu1 %v2629_v0 }
  0x75   : > { %2172 = vmatmul.mubr.msk.bf16.gmra.mxu0 %vm520_vm1, %v2454_v19  ;;  %v2479_v19 = vld [vmem:[%s3302_s5 + $0x18] sm:$0xff]  }
  0x76   : > { %2208 = vmatmul.mubr.msk.bf16.gmra.mxu1 %vm941_vm2, %v2464_v25  ;;  %679 = vmatprep.mubr.bf16.mxu0 %v2629_v0 }
  0x77   : > { %1030 = vmatprep.mubr.bf16.mxu1 %v2629_v0 }
  0x7d   : > { %2173 = vmatmul.mubr.msk.bf16.gmra.mxu0 %vm520_vm1, %v2458_v20 }
  0x7e   : > { %2209 = vmatmul.mubr.msk.bf16.gmra.mxu1 %vm941_vm2, %v2465_v26  ;;  %689 = vmatprep.mubr.bf16.mxu0 %v2629_v0 }
  0x7f   : > { %1040 = vmatprep.mubr.bf16.mxu1 %v2629_v0 }
  0x85   : > { %2174 = vmatmul.mubr.msk.bf16.gmra.mxu0 %vm520_vm1, %v2459_v21 }
  0x86   : > { %2210 = vmatmul.mubr.msk.bf16.gmra.mxu1 %vm941_vm2, %v2466_v27  ;;  %699 = vmatprep.mubr.bf16.mxu0 %v2629_v0 }
  0x87   : > { %1050 = vmatprep.mubr.bf16.mxu1 %v2629_v0 }
  0x8d   : > { %2175 = vmatmul.mubr.msk.bf16.gmra.mxu0 %vm520_vm1, %v2460_v22 }
  0x8e   : > { %2211 = vmatmul.mubr.msk.bf16.gmra.mxu1 %vm941_vm2, %v2467_v28  ;;  %709 = vmatprep.mubr.bf16.mxu0 %v2629_v0 }
  0x8f   : > { %1060 = vmatprep.mubr.bf16.mxu1 %v2629_v0 }
  0x95   : > { %2176 = vmatmul.mubr.msk.bf16.gmra.mxu0 %vm520_vm1, %v2461_v23 }
  0x96   : > { %2212 = vmatmul.mubr.msk.bf16.gmra.mxu1 %vm941_vm2, %v2468_v29  ;;  %2312 = vmatprep.mubr.msk.bf16.mxu0 %vm941_vm2, %v2462_v24  ;;  %v2480_v24 = vld [vmem:[%s3302_s5 + $0x10] sm:$0xff]  }
  0x97   : > { %1070 = vmatprep.mubr.bf16.mxu1 %v2629_v0 }
  0x9d   : > { %2313 = vmatmul.mubr.msk.bf16.vlgmr.msra.gmra.mxu0 %vm941_vm2, %v2464_v25 }
  0x9e   : > { %2213 = vmatmul.mubr.msk.bf16.gmra.mxu1 %vm941_vm2, %v2469_v30  ;;  %2316 = vmatprep.mubr.msk.bf16.mxu0 %vm941_vm2, %v2465_v26 }
  0x9f   : > { %1080 = vmatprep.mubr.bf16.mxu1 %v2629_v0  ;;  %2337 = vmatpush3.bf16.msra.mxu0 %v2475_v61 }
  0xa0   : > { %2338 = vmatprep.subr.bf16.mxu0 %v2630_v60 }
  0xa3   : > { %2339 = vmatpush3.bf16.msra.mxu0 %v2476_v2 }
  0xa4   : > { %2340 = vmatprep.subr.bf16.mxu0 %v2630_v60 }
  0xa5   : > { %2317 = vmatmul.mubr.msk.bf16.gmra.mxu0 %vm941_vm2, %v2466_v27 }
  0xa6   : > { %2214 = vmatmul.mubr.msk.bf16.gmra.mxu1 %vm941_vm2, %v2470_v31  ;;  %2320 = vmatprep.mubr.msk.bf16.mxu0 %vm941_vm2, %v2467_v28 }
  0xa7   : > { %1090 = vmatprep.mubr.bf16.mxu1 %v2629_v0  ;;  %2341 = vmatpush3.bf16.msra.mxu0 %v2477_v9 }
  0xa8   : > { %2342 = vmatprep.subr.bf16.mxu0 %v2630_v60 }
  0xab   : > { %2343 = vmatpush3.bf16.msra.mxu0 %v2478_v14 }
  0xac   : > { %2344 = vmatprep.subr.bf16.mxu0 %v2630_v60 }
  0xad   : > { %2321 = vmatmul.mubr.msk.bf16.gmra.mxu0 %vm941_vm2, %v2468_v29  ;;  %v2481_v29 = vld [vmem:[%s3302_s5 + $0x8] sm:$0xff]  }
  0xae   : > { %2215 = vmatmul.mubr.msk.bf16.gmra.mxu1 %vm941_vm2, %v2471_v32  ;;  %2324 = vmatprep.mubr.msk.bf16.mxu0 %vm941_vm2, %v2469_v30 }
  0xaf   : > { %1100 = vmatprep.mubr.bf16.mxu1 %v2629_v0  ;;  %2345 = vmatpush3.bf16.msra.mxu0 %v2479_v19 }
  0xb0   : > { %2346 = vmatprep.subr.bf16.mxu0 %v2630_v60 }
  0xb3   : > { %2347 = vmatpush3.bf16.msra.mxu0 %v2480_v24 }
  0xb4   : > { %2348 = vmatprep.subr.bf16.mxu0 %v2630_v60 }
  0xb5   : > { %2325 = vmatmul.mubr.msk.bf16.gmra.mxu0 %vm941_vm2, %v2470_v31 }
  0xb6   : > { %2216 = vmatmul.mubr.msk.bf16.gmra.mxu1 %vm941_vm2, %v2472_v33  ;;  %2328 = vmatprep.mubr.msk.bf16.mxu0 %vm941_vm2, %v2471_v32 }
  0xb7   : > { %1110 = vmatprep.mubr.bf16.mxu1 %v2629_v0  ;;  %2349 = vmatpush3.bf16.msra.mxu0 %v2481_v29 }
  0xb8   : > { %2350 = vmatprep.subr.bf16.mxu0 %v2630_v60 }
  0xbd   : > { %2329 = vmatmul.mubr.msk.bf16.gmra.mxu0 %vm941_vm2, %v2472_v33 }
  0xbe   : > { %2217 = vmatmul.mubr.msk.bf16.gmra.mxu1 %vm941_vm2, %v2473_v34  ;;  %2332 = vmatprep.mubr.msk.bf16.mxu0 %vm941_vm2, %v2473_v34  ;;  %v2482_v34 = vld [vmem:[%s3302_s5] sm:$0xff]  }
  0xbf   : > { %1120 = vmatprep.mubr.bf16.mxu1 %v2629_v0  ;;  %2351 = vmatpush3.bf16.msra.mxu0 %v2482_v34 }
  0xc5   : > { %2333 = vmatmul.mubr.msk.bf16.gmra.mxu0 %vm941_vm2, %v2474_v35 }
  0xc6   : > { %2218 = vmatmul.mubr.msk.bf16.gmra.mxu1 %vm941_vm2, %v2474_v35  ;;  %2352 = vmatprep.mubr.msk.bf16.mxu0 %vm2631_vm3, %v2630_v60 }
  0xfd   : > { %v2886_v36 = vpop.f32.mrf.mxu0 }
  0xfe   : > { %v2888_v37 = vpop.f32.mrf.mxu1 }
  0xff   : > { %v2890_v38 = vpop.f32.mrf.mxu0 }
 0x100   : > { %v2892_v39 = vpop.f32.mrf.mxu1 }
 0x101   : > { %v2894_v40 = vpop.f32.mrf.mxu0 }
 0x102   : > { %v2896_v41 = vpop.f32.mrf.mxu1 }
 0x103   : > { %v2898_v42 = vpop.f32.mrf.mxu0 }
 0x104   : > { %v2900_v43 = vpop.f32.mrf.mxu1 }
 0x105   : > { %v2902_v44 = vpop.f32.mrf.mxu0 }
 0x106   : > { %v2904_v45 = vpop.f32.mrf.mxu1 }
 0x107   : > { %v2906_v46 = vpop.f32.mrf.mxu0 }
 0x108   : > { %v2908_v47 = vpop.f32.mrf.mxu1 }
 0x109   : > { %v2910_v48 = vpop.f32.mrf.mxu0 }
 0x10a   : > { %v2912_v49 = vpop.f32.mrf.mxu1 }
 0x10b   : > { %v2914_v50 = vpop.f32.mrf.mxu0 }
 0x10c   : > { %v2916_v51 = vpop.f32.mrf.mxu1 }
 0x10d   : > { %v2918_v52 = vpop.f32.mrf.mxu0 }
 0x10e   : > { %v2920_v53 = vpop.f32.mrf.mxu1 }
 0x10f   : > { %v2922_v54 = vpop.f32.mrf.mxu0 }
 0x110   : > { %v2924_v55 = vpop.f32.mrf.mxu1 }
 0x111   : > { %v2926_v56 = vpop.f32.mrf.mxu0 }
 0x112   : > { %v2928_v57 = vpop.f32.mrf.mxu1 }
 0x113   : > { %v2930_v58 = vpop.f32.mrf.mxu0 }
 0x114   : > { %v2932_v59 = vpop.f32.mrf.mxu1 }
 0x115   : > { %v2937_v62 = vpop.f32.mrf.mxu0 }
 0x116   : > { %v2939_v63 = vpop.f32.mrf.mxu1 }
 0x117   : > { %v2941_v0 = vpop.f32.mrf.mxu0 }
 0x118   : > { %v2943_v1 = vpop.f32.mrf.mxu1 }
 0x119   : > { %v2948_v3 = vpop.f32.mrf.mxu0 }
 0x11a   : > { %v2950_v4 = vpop.f32.mrf.mxu1 }
 0x11b   : > { %v2952_v5 = vpop.f32.mrf.mxu0 }
 0x11c   : > { %v2954_v6 = vpop.f32.mrf.mxu1 }
 0x11d   : > { %v2956_v7 = vpop.f32.mrf.mxu0 }
 0x11e   : > { %v2958_v8 = vpop.f32.mrf.mxu1 }
 0x11f   : > { %3311 = vst [vmem:[#allocation14_spill] sm:$0xff] %v2958_v8  ;;  %v2963_v10 = vpop.f32.mrf.mxu0 }
 0x120   : > { %v2965_v11 = vpop.f32.mrf.mxu1 }
 0x121   : > { %3312 = vst [vmem:[#allocation15_spill] sm:$0xff] %v2965_v11  ;;  %v2967_v12 = vpop.f32.mrf.mxu0 }
 0x122   : > { %v2969_v13 = vpop.f32.mrf.mxu1 }
 0x123   : > { %3313 = vst [vmem:[#allocation16_spill] sm:$0xff] %v2969_v13  ;;  %v2974_v15 = vpop.f32.mrf.mxu0 }
 0x124   : > { %v2976_v16 = vpop.f32.mrf.mxu1 }
 0x125   : > { %3314 = vst [vmem:[#allocation17_spill] sm:$0xff] %v2976_v16  ;;  %v2978_v17 = vpop.f32.mrf.mxu0 }
 0x126   : > { %v2980_v18 = vpop.f32.mrf.mxu1 }
 0x127   : > { %3315 = vst [vmem:[#allocation18_spill] sm:$0xff] %v2980_v18  ;;  %v2985_v20 = vpop.f32.mrf.mxu0 }
 0x128   : > { %v2987_v21 = vpop.f32.mrf.mxu1 }
 0x129   : > { %3316 = vst [vmem:[#allocation19_spill] sm:$0xff] %v2987_v21  ;;  %v2989_v22 = vpop.f32.mrf.mxu0 }
 0x12a   : > { %v2991_v23 = vpop.f32.mrf.mxu1 }
 0x12b   : > { %3317 = vst [vmem:[#allocation20_spill] sm:$0xff] %v2991_v23  ;;  %v2996_v25 = vpop.f32.mrf.mxu0 }
 0x12c   : > { %v2998_v26 = vpop.f32.mrf.mxu1 }
 0x12d   : > { %3318 = vst [vmem:[#allocation21_spill] sm:$0xff] %v2998_v26  ;;  %v3000_v27 = vpop.f32.mrf.mxu0 }
 0x12e   : > { %v1012_v28 = vpop.f32.mrf.mxu1 }
 0x12f   : > { %v1013_v30 = vadd.f32 %v1012_v28, %v2886_v36  ;;  %v3006_v31 = vpop.f32.mrf.mxu0 }
 0x130   : > { %v1014_v32 = vpop.f32.mrf.mxu1 }
 0x131   : > { %v1015_v33 = vadd.f32 %v1014_v32, %v2890_v38  ;;  %v3012_v35 = vpop.f32.mrf.mxu0 }
 0x132   : > { %v1016_v61 = vpop.f32.mrf.mxu1 }
 0x133   : > { %v1017_v2 = vadd.f32 %v1016_v61, %v2894_v40  ;;  %v3015_v9 = vpop.f32.mrf.mxu0  ;;  %v1379_v24 = vrot.slane %v1015_v33, 1 }
 0x134   : > { %v1018_v36 = vpop.f32.mrf.mxu1 }
 0x135   : > { %v1019_v14 = vadd.f32 %v1018_v36, %v2898_v42  ;;  %v3018_v19 = vpop.f32.mrf.mxu0 }
 0x136   : > { %v1022_v38 = vpop.f32.mrf.mxu1 }
 0x137   : > { %v1380_v28 = vrot.slane %v1019_v14, 1  ;;  %v1023_v29 = vadd.f32 %v1022_v38, %v2902_v44  ;;  %v3021_v32 = vpop.f32.mrf.mxu0 }
 0x138   : > { %v1024_v26 = vpop.f32.mrf.mxu1 }
 0x139   : > { %v1381_v60 = vsel %vm1378_vm4, %v1379_v24, %v1380_v28  ;;  %v1025_v40 = vadd.f32 %v1024_v26, %v2906_v46  ;;  %v3027_v23 = vpop.f32.mrf.mxu0 }
 0x13a   : > { %v3025_v61 = vadd.f32 %v1381_v60, %v1013_v30  ;;  %v1026_v42 = vpop.f32.mrf.mxu1 }
 0x13b   : > { %v1382_v34 = vrot.slane %v1025_v40, 1  ;;  %v1027_v36 = vadd.f32 %v1026_v42, %v2910_v48  ;;  %v3030_v18 = vpop.f32.mrf.mxu0 }
 0x13c   : > { %v1028_v33 = vpop.f32.mrf.mxu1 }
 0x13d   : > { %v1383_v44 = vsel %vm1378_vm4, %v1380_v28, %v1382_v34  ;;  %v1029_v14 = vadd.f32 %v1028_v33, %v2914_v50  ;;  %v3036_v24 = vpop.f32.mrf.mxu0 }
 0x13e   : > { %v3034_v38 = vadd.f32 %v1383_v44, %v1017_v2  ;;  %v1032_v46 = vpop.f32.mrf.mxu1 }
 0x13f   : > { %v1033_v26 = vadd.f32 %v1032_v46, %v2918_v52  ;;  %v3039_v30 = vpop.f32.mrf.mxu0  ;;  %v1384_v21 = vrot.slane %v1029_v14, 1 }
 0x140   : > { %v1034_v60 = vpop.f32.mrf.mxu1 }
 0x141   : > { %v1035_v40 = vadd.f32 %v1034_v60, %v2922_v54  ;;  %v3042_v48 = vpop.f32.mrf.mxu0 }
 0x142   : > { %v1036_v42 = vpop.f32.mrf.mxu1 }
 0x143   : > { %v1385_v16 = vrot.slane %v1035_v40, 1  ;;  %v3044_v28 = vpop.f32.mrf.mxu0  ;;  %v1037_v13 = vadd.f32 %v1036_v42, %v2926_v56 }
 0x144   : > { %v1038_v50 = vpop.f32.mrf.mxu1 }
 0x145   : > { %v1386_v2 = vsel %vm1378_vm4, %v1384_v21, %v1385_v16  ;;  %v1039_v33 = vadd.f32 %v1038_v50, %v2930_v58  ;;  %v3050_v52 = vpop.f32.mrf.mxu0 }
 0x146   : > { %v3048_v44 = vadd.f32 %v1386_v2, %v1027_v36  ;;  %v1042_v46 = vpop.f32.mrf.mxu1  ;;  %v1445_v2 = vadd.f32 %v1382_v34, %v1023_v29 }
 0x147   : > { %v1387_v54 = vrot.slane %v1039_v33, 1  ;;  %v1043_v60 = vadd.f32 %v1042_v46, %v2937_v62  ;;  %v3054_v11 = vpop.f32.mrf.mxu0 }
 0x148   : > { %v1044_v14 = vpop.f32.mrf.mxu1 }
 0x149   : > { %v1388_v40 = vsel %vm1378_vm4, %v1385_v16, %v1387_v54  ;;  %v3057_v8 = vadd.f32 %v1387_v54, %v1037_v13  ;;  %v1045_v21 = vadd.f32 %v1044_v14, %v2941_v0  ;;  %v3062_v36 = vpop.f32.mrf.mxu0 }
 0x14a   : > { %v3060_v58 = vadd.f32 %v1388_v40, %v1033_v26  ;;  %3319 = vst [vmem:[#allocation22_spill] sm:$0xff] %v3062_v36  ;;  %v1046_v50 = vpop.f32.mrf.mxu1 }
 0x14b   : > { %v1047_v56 = vadd.f32 %v1046_v50, %v2948_v3  ;;  %v3065_v42 = vpop.f32.mrf.mxu0  ;;  %v1389_v16 = vrot.slane %v1045_v21, 1 }
 0x14c   : > { %v1048_v62 = vpop.f32.mrf.mxu1 }
 0x14d   : > { %v1049_v33 = vadd.f32 %v1048_v62, %v2952_v5  ;;  %v3068_v46 = vpop.f32.mrf.mxu0 }
 0x14e   : > { %v1052_v13 = vpop.f32.mrf.mxu1 }
 0x14f   : > { %v1390_v54 = vrot.slane %v1049_v33, 1  ;;  %v1053_v0 = vadd.f32 %v1052_v13, %v2956_v7  ;;  %v3071_v26 = vpop.f32.mrf.mxu0 }
 0x150   : > { %3320 = vst [vmem:[#allocation23_spill] sm:$0xff] %v3071_v26  ;;  %v1054_v14 = vpop.f32.mrf.mxu1 }
 0x151   : > { %v1391_v29 = vsel %vm1378_vm4, %v1389_v16, %v1390_v54  ;;  %v1055_v3 = vadd.f32 %v1054_v14, %v2963_v10  ;;  %v3077_v40 = vpop.f32.mrf.mxu0 }
 0x152   : > { %v3075_v34 = vadd.f32 %v1391_v29, %v1043_v60  ;;  %3321 = vst [vmem:[#allocation24_spill] sm:$0xff] %v3077_v40  ;;  %v1056_v5 = vpop.f32.mrf.mxu1 }
 0x153   : > { %v1392_v50 = vrot.slane %v1055_v3, 1  ;;  %v3079_v62 = vpop.f32.mrf.mxu0  ;;  %v1686_v3 = vlaneseq }
 0x154   : > { %3322 = vst [vmem:[#allocation25_spill] sm:$0xff] %v3079_v62  ;;  %v1058_v21 = vpop.f32.mrf.mxu1 }
 0x155   : > { %v1393_v33 = vsel %vm1378_vm4, %v1390_v54, %v1392_v50  ;;  %v3082_v7 = vadd.f32 %v1392_v50, %v1053_v0  ;;  %v3086_v36 = vpop.f32.mrf.mxu0  ;;  %v1059_v10 = vadd.f32 %v1058_v21, %v2974_v15 }
 0x156   : > { %v3084_v13 = vadd.f32 %v1393_v33, %v1047_v56  ;;  %3323 = vst [vmem:[#allocation26_spill] sm:$0xff] %v3086_v36  ;;  %v1062_v16 = vpop.f32.mrf.mxu1  ;;  %v1057_v56 = vadd.f32 %v1056_v5, %v2967_v12 }
 0x157   : > { %v3089_v60 = vpop.f32.mrf.mxu0  ;;  %v1394_v26 = vrot.slane %v1059_v10, 1 }
 0x158   : > { %3324 = vst [vmem:[#allocation27_spill] sm:$0xff] %v3089_v60  ;;  %v1064_v14 = vpop.f32.mrf.mxu1  ;;  %v1687_v60 = vshrl.u32 %v1686_v3, 7 }
 0x159   : > { %v1065_v29 = vadd.f32 %v1064_v14, %v2985_v20  ;;  %v3092_v40 = vpop.f32.mrf.mxu0 }
 0x15a   : > { %3325 = vst [vmem:[#allocation28_spill] sm:$0xff] %v3092_v40  ;;  %v1066_v62 = vpop.f32.mrf.mxu1 }
 0x15b   : > { %v1395_v54 = vrot.slane %v1065_v29, 1  ;;  %v1067_v0 = vadd.f32 %v1066_v62, %v2989_v22  ;;  %v3096_v50 = vpop.f32.mrf.mxu0  ;;  %v1063_v22 = vadd.f32 %v1062_v16, %v2978_v17 }
 0x15c   : > { %3326 = vst [vmem:[#allocation29_spill] sm:$0xff] %v3096_v50  ;;  %v1068_v33 = vpop.f32.mrf.mxu1 }
 0x15d   : > { %v1396_v15 = vsel %vm1378_vm4, %v1394_v26, %v1395_v54  ;;  %v1069_v21 = vadd.f32 %v1068_v33, %v2996_v25  ;;  %v2314_v40 = vpop.f32.mrf.mxu0  ;;  %v3107_v26 = vadd.s32 16, %v1687_v60 }
 0x15e   : > { %v3100_v20 = vadd.f32 %v1396_v15, %v1057_v56  ;;  %v1072_v14 = vpop.f32.mrf.mxu1  ;;  %v1174_v10 = vadd.f32 %v2314_v40, %v2888_v37 }
 0x15f   : > { %v1397_v36 = vrot.slane %v1069_v21, 1  ;;  %v1165_v12 = vpop.f32.mrf.mxu0  ;;  %vm1696_vm8 = vcmp.lt.s32.totalorder %v3107_v26, 18 }
 0x160   : > { %v1074_v62 = vpop.f32.mrf.mxu1  ;;  %v1495_v50 = vrot.slane %v1174_v10, 2  ;;  %v1166_v15 = vadd.f32 %v1165_v12, %v2892_v39  ;;  %v1073_v39 = vadd.f32 %v1072_v14, %v3000_v27 }
 0x161   : > { %v1398_v5 = vsel %vm1378_vm4, %v1395_v54, %v1397_v36  ;;  %v3105_v29 = vadd.f32 %v1397_v36, %v1067_v0  ;;  %v1075_v3 = vadd.f32 %v1074_v62, %v3006_v31  ;;  %v2315_v33 = vpop.f32.mrf.mxu0 }
 0x162   : > { %v3109_v25 = vadd.f32 %v1398_v5, %v1063_v22  ;;  %v1076_v56 = vpop.f32.mrf.mxu1  ;;  %v1558_v37 = vadd.f32 %v1495_v50, %v1445_v2  ;;  %v1492_v21 = vrot.slane %v1166_v15, 2  ;;  %v1177_v62 = vadd.f32 %v2315_v33, %v2896_v41 }
 0x163   : > { %v1168_v17 = vpop.f32.mrf.mxu0  ;;  %v1399_v60 = vrot.slane %v1075_v3, 1 }
 0x164   : > { %v1078_v40 = vpop.f32.mrf.mxu1  ;;  %v1169_v36 = vadd.f32 %v1168_v17, %v2900_v43  ;;  %v1699_v2 = vsel %vm1696_vm8, %v1558_v37, -inf  ;;  %v1497_v17 = vrot.slane %v1177_v62, 2 }
 0x165   : > { %v1079_v16 = vadd.f32 %v1078_v40, %v3015_v9  ;;  %v2318_v0 = vpop.f32.mrf.mxu0  ;;  %v1723_v37 = vsel %vm1491_vm9, %v1699_v2, -inf }
 0x166   : > { %v1082_v54 = vpop.f32.mrf.mxu1  ;;  %v1493_v31 = vrot.slane %v1169_v36, 2  ;;  %v1190_v36 = vadd.f32 %v2318_v0, %v2904_v45 }
 0x167   : > { %v1400_v10 = vrot.slane %v1079_v16, 1  ;;  %v1083_v22 = vadd.f32 %v1082_v54, %v3018_v19  ;;  %v1181_v12 = vpop.f32.mrf.mxu0 }
 0x168   : > { %v1084_v9 = vpop.f32.mrf.mxu1  ;;  %v1494_v5 = vsel %vm1491_vm9, %v1492_v21, %v1493_v31  ;;  %v1496_v3 = vsel %vm1491_vm9, %v1493_v31, %v1495_v50  ;;  %v1182_v33 = vadd.f32 %v1181_v12, %v2908_v47  ;;  %v1502_v0 = vrot.slane %v1190_v36, 2 }
 0x169   : > { %v1401_v43 = vsel %vm1378_vm4, %v1399_v60, %v1400_v10  ;;  %v1556_v19 = vadd.f32 %v1494_v5, %v3025_v61  ;;  %v1557_v27 = vadd.f32 %v1496_v3, %v3034_v38  ;;  %v2319_v40 = vpop.f32.mrf.mxu0  ;;  %v1085_v41 = vadd.f32 %v1084_v9, %v3021_v32 }
 0x16a   : > { %v3124_v15 = vadd.f32 %v1401_v43, %v1073_v39  ;;  %v1086_v14 = vpop.f32.mrf.mxu1  ;;  %v1193_v50 = vadd.f32 %v2319_v40, %v2912_v49  ;;  %v1498_v61 = vrot.slane %v1182_v33, 2  ;;  %v1077_v39 = vadd.f32 %v1076_v56, %v3012_v35 }
 0x16b   : > { %v1722_v16 = vmax.f32 %v1556_v19, %v1557_v27  ;;  %v1184_v54 = vpop.f32.mrf.mxu0  ;;  %v1402_v21 = vrot.slane %v1085_v41, 1 }
 0x16c   : > { %v1088_v60 = vpop.f32.mrf.mxu1  ;;  %v1185_v31 = vadd.f32 %v1184_v54, %v2916_v51  ;;  %v1503_v32 = vrot.slane %v1193_v50, 2  ;;  %v1499_v45 = vsel %vm1491_vm9, %v1497_v17, %v1498_v61 }
 0x16d   : > { %v1089_v38 = vadd.f32 %v1088_v60, %v3030_v18  ;;  %v1724_v2 = vmax.f32 %v1722_v16, %v1723_v37  ;;  %v2322_v47 = vpop.f32.mrf.mxu0  ;;  %v1403_v62 = vsel %vm1378_vm4, %v1400_v10, %v1402_v21  ;;  %v3137_v12 = vadd.f32 %v1402_v21, %v1083_v22 }
 0x16e   : > { %v1092_v9 = vpop.f32.mrf.mxu1  ;;  %v3140_v43 = vadd.f32 %v1403_v62, %v1077_v39  ;;  %v1087_v18 = vadd.f32 %v1086_v14, %v3027_v23  ;;  %v1559_v35 = vadd.f32 %v1499_v45, %v3048_v44  ;;  %v1500_v3 = vrot.slane %v1185_v31, 2 }
 0x16f   : > { %v1725_v49 = vrot.slane %v1724_v2, 4  ;;  %v1197_v5 = vpop.f32.mrf.mxu0  ;;  %v1404_v56 = vrot.slane %v1089_v38, 1  ;;  %v1504_v10 = vsel %vm1491_vm9, %v1502_v0, %v1503_v32  ;;  %v1206_v17 = vadd.f32 %v2322_v47, %v2920_v53 }
 0x170   : > { %v1094_v51 = vpop.f32.mrf.mxu1  ;;  %v1198_v27 = vadd.f32 %v1197_v5, %v2924_v55  ;;  %v1501_v41 = vsel %vm1491_vm9, %v1498_v61, %v1500_v3  ;;  %v1561_v33 = vadd.f32 %v1500_v3, %v3057_v8  ;;  %v1562_v54 = vadd.f32 %v1504_v10, %v3075_v34 }
 0x171   : > { %v1726_v19 = vmax.f32 %v1724_v2, %v1725_v49  ;;  %v1095_v22 = vadd.f32 %v1094_v51, %v3039_v30  ;;  %v2323_v37 = vpop.f32.mrf.mxu0  ;;  %v1560_v44 = vadd.f32 %v1501_v41, %v3060_v58  ;;  %v1508_v45 = vrot.slane %v1206_v17, 2 }
 0x172   : > { %v1096_v40 = vpop.f32.mrf.mxu1  ;;  %v1702_v30 = vsel %vm1696_vm8, %v1561_v33, -inf  ;;  %v1505_v55 = vrot.slane %v1198_v27, 2  ;;  %v1209_v60 = vadd.f32 %v2323_v37, %v2928_v57 }
 0x173   : > { %v1097_v23 = vadd.f32 %v1096_v40, %v3042_v48  ;;  %v1727_v14 = vrot.slane %v1726_v19, 2  ;;  %v1405_v16 = vrot.slane %v1095_v22, 1  ;;  %v1200_v50 = vpop.f32.mrf.mxu0  ;;  %v1731_v21 = vmax.f32 %v1559_v35, %v1560_v44 }
 0x174   : > { %v1098_v36 = vpop.f32.mrf.mxu1  ;;  %v1732_v8 = vsel %vm1491_vm9, %v1702_v30, -inf  ;;  %v1506_v53 = vsel %vm1491_vm9, %v1503_v32, %v1505_v55  ;;  %v1564_v31 = vadd.f32 %v1505_v55, %v3082_v7  ;;  %v1510_v57 = vrot.slane %v1209_v60, 2 }
 0x175   : > { %v1406_v48 = vsel %vm1378_vm4, %v1404_v56, %v1405_v16  ;;  %v2326_v58 = vpop.f32.mrf.mxu0  ;;  %v1728_v39 = vmax.f32 %v1726_v19, %v1727_v14  ;;  %v1733_v2 = vmax.f32 %v1731_v21, %v1732_v8  ;;  %v1563_v47 = vadd.f32 %v1506_v53, %v3084_v13 }
 0x176   : > { %v1102_v61 = vpop.f32.mrf.mxu1  ;;  %v3158_v38 = vadd.f32 %v1406_v48, %v1087_v18  ;;  %v1705_v49 = vsel %vm1696_vm8, %v1564_v31, -inf  ;;  %v1099_v0 = vadd.f32 %v1098_v36, %v3044_v28  ;;  %v1201_v18 = vadd.f32 %v1200_v50, %v2932_v59 }
 0x177   : > { %v1213_v34 = vpop.f32.mrf.mxu0  ;;  %v1734_v51 = vrot.slane %v1733_v2, 4  ;;  %v1093_v32 = vadd.f32 %v1092_v9, %v3036_v24  ;;  %v1740_v5 = vmax.f32 %v1562_v54, %v1563_v47  ;;  %v1741_v7 = vsel %vm1491_vm9, %v1705_v49, -inf }
 0x178   : > { %v1104_v62 = vpop.f32.mrf.mxu1  ;;  %v1511_v56 = vsel %vm1491_vm9, %v1508_v45, %v1510_v57  ;;  %v1567_v3 = vadd.f32 %v1510_v57, %v3105_v29  ;;  %v1407_v19 = vrot.slane %v1099_v0, 1  ;;  %v1507_v10 = vrot.slane %v1201_v18, 2 }
 0x179   : > { %v2327_v13 = vpop.f32.mrf.mxu0  ;;  %v1729_v22 = vrot.slane %v1728_v39, 1  ;;  %v1735_v27 = vmax.f32 %v1733_v2, %v1734_v51  ;;  %v1742_v28 = vmax.f32 %v1740_v5, %v1741_v7  ;;  %v1222_v59 = vadd.f32 %v2326_v58, %v2939_v63 }
 0x17a   : > { %v3169_v35 = vpop.f32.mrf.mxu1  ;;  %v1566_v24 = vadd.f32 %v1511_v56, %v3109_v25  ;;  %v1408_v9 = vsel %vm1378_vm4, %v1405_v16, %v1407_v19  ;;  %v3176_v41 = vadd.f32 %v1407_v19, %v1097_v23  ;;  %v1509_v33 = vsel %vm1491_vm9, %v1507_v10, %v1508_v45 }
 0x17b   : > { %v1216_v37 = vpop.f32.mrf.mxu0  ;;  %v1736_v14 = vrot.slane %v1735_v27, 2  ;;  %v1743_v44 = vrot.slane %v1742_v28, 4  ;;  %v1708_v29 = vsel %vm1696_vm8, %v1567_v3, -inf  ;;  %v3181_v17 = vadd.f32 %v1408_v9, %v1093_v32 }
 0x17c   : > { %v1108_v40 = vpop.f32.mrf.mxu1  ;;  %v1565_v63 = vadd.f32 %v1509_v33, %v3100_v20  ;;  %v1515_v30 = vrot.slane %v1222_v59, 2  ;;  %v1105_v25 = vadd.f32 %v1104_v62, %v3054_v11  ;;  %v1214_v23 = vadd.f32 %v1213_v34, %v2943_v1 }
 0x17d   : > { %v2330_v50 = vpop.f32.mrf.mxu0  ;;  %v1737_v55 = vmax.f32 %v1735_v27, %v1736_v14  ;;  %v1744_v16 = vmax.f32 %v1742_v28, %v1743_v44  ;;  %v1103_v8 = vadd.f32 %v1102_v61, %v3050_v52  ;;  %v1730_v58 = vmax.f32 %v1728_v39, %v1729_v22 }
 0x17e   : > { %v1112_v36 = vpop.f32.mrf.mxu1  ;;  %v1749_v21 = vmax.f32 %v1565_v63, %v1566_v24  ;;  %v1570_v48 = vadd.f32 %v1515_v30, %v3137_v12  ;;  %v1750_v2 = vsel %vm1491_vm9, %v1708_v29, -inf  ;;  %v1409_v11 = vrot.slane %v1105_v25, 1 }
 0x17f   : > { %v1229_v54 = vpop.f32.mrf.mxu0  ;;  %v1738_v53 = vrot.slane %v1737_v55, 1  ;;  %v1745_v31 = vrot.slane %v1744_v16, 2  ;;  %v1109_v62 = vadd.f32 %v1108_v40, %v3065_v42  ;;  %v1217_v1 = vadd.f32 %v1216_v37, %v2954_v6  ;;  %v3327_v6 = vld [vmem:[#allocation23_spill] sm:$0xff]  ;;  %v3328_v40 = vld [vmem:[#allocation22_spill] sm:$0xff] }
 0x180   : > { %v1114_v60 = vpop.f32.mrf.mxu1  ;;  %v1751_v57 = vmax.f32 %v1749_v21, %v1750_v2  ;;  %v1512_v49 = vrot.slane %v1214_v23, 2  ;;  %v1225_v52 = vadd.f32 %v2327_v13, %v2950_v4  ;;  %v1711_v39 = vsel %vm1696_vm8, %v1570_v48, -inf  ;;  %v3329_v37 = vld [vmem:[#allocation14_spill] sm:$0xff] }
 0x181   : > { %v2331_v47 = vpop.f32.mrf.mxu0  ;;  %v1739_v34 = vmax.f32 %v1737_v55, %v1738_v53  ;;  %v1746_v45 = vmax.f32 %v1744_v16, %v1745_v31  ;;  %v1410_v0 = vrot.slane %v1109_v62, 1  ;;  %v1513_v18 = vrot.slane %v1217_v1, 2 }
 0x182   : > { %v1116_v20 = vpop.f32.mrf.mxu1  ;;  %v1752_v61 = vrot.slane %v1751_v57, 4  ;;  %v1113_v42 = vadd.f32 %v1112_v36, %v3068_v46  ;;  %v1115_v7 = vadd.f32 %v1114_v60, %v3327_v6  ;;  %v1107_v46 = vadd.f32 %v3169_v35, %v3328_v40  ;;  %v3330_v36 = vld [vmem:[#allocation15_spill] sm:$0xff]  ;;  %v3331_v35 = vld [vmem:[#allocation16_spill] sm:$0xff] }
 0x183   : > { %v1232_v51 = vpop.f32.mrf.mxu0  ;;  %v1803_v32 = vsel %vm1802_vm6, %v1739_v34, %v1730_v58  ;;  %v1747_v5 = vrot.slane %v1746_v45, 1  ;;  %v1411_v4 = vsel %vm1378_vm4, %v1409_v11, %v1410_v0  ;;  %v1514_v13 = vsel %vm1491_vm9, %v1512_v49, %v1513_v18  ;;  %v3333_v58 = vld [vmem:[#allocation17_spill] sm:$0xff] }
 0x184   : > { %v1118_v12 = vpop.f32.mrf.mxu1  ;;  %v1753_v3 = vmax.f32 %v1751_v57, %v1752_v61  ;;  %v1516_v19 = vsel %vm1491_vm9, %v1513_v18, %v1515_v30  ;;  %v1461_v22 = vadd.f32 %v1411_v4, %v1103_v8  ;;  %v1568_v27 = vadd.f32 %v1514_v13, %v3124_v15  ;;  %v3332_v8 = vld [vmem:[#allocation25_spill] sm:$0xff]  ;;  %v3334_v57 = vld [vmem:[#allocation24_spill] sm:$0xff]  ;;  %v3335_v61 = vld [vmem:[#allocation26_spill] sm:$0xff] }
 0x185   : > { %v1748_v10 = vmax.f32 %v1746_v45, %v1747_v5  ;;  %v1569_v28 = vadd.f32 %v1516_v19, %v3140_v43  ;;  %v1238_v24 = vadd.f32 %v2330_v50, %v3329_v37  ;;  %v1412_v9 = vrot.slane %v1115_v7, 1  ;;  %v2334_v33 = vpop.f32.mrf.mxu0  ;;  %v3338_v5 = vld [vmem:[#allocation28_spill] sm:$0xff] }
 0x186   : > { %v1122_v56 = vpop.f32.mrf.mxu1  ;;  %v1754_v59 = vrot.slane %v1753_v3, 2  ;;  %v1759_v44 = vsel %vm1491_vm9, %v1711_v39, -inf  ;;  %v1230_v63 = vadd.f32 %v1229_v54, %v3330_v36  ;;  %v1517_v15 = vrot.slane %v1225_v52, 2 }
 0x187   : > { %v1805_v14 = vsel %vm1804_vm7, %v1748_v10, %v1803_v32  ;;  %v1758_v29 = vmax.f32 %v1568_v27, %v1569_v28  ;;  %v1463_v55 = vadd.f32 %v1412_v9, %v1113_v42  ;;  %v1413_v16 = vsel %vm1378_vm4, %v1410_v0, %v1412_v9  ;;  %v1245_v31 = vpop.f32.mrf.mxu0  ;;  %v3339_v28 = vld [vmem:[#allocation18_spill] sm:$0xff]  ;;  %v3340_v9 = vld [vmem:[#allocation20_spill] sm:$0xff] }
 0x188   : > { %v1124_v30 = vpop.f32.mrf.mxu1  ;;  %v1755_v25 = vmax.f32 %v1753_v3, %v1754_v59  ;;  %v1518_v23 = vrot.slane %v1230_v63, 2  ;;  %v1241_v60 = vadd.f32 %v2331_v47, %v3331_v35  ;;  %v1522_v21 = vrot.slane %v1238_v24, 2 }
 0x189   : > { %v1760_v43 = vmax.f32 %v1758_v29, %v1759_v44  ;;  %v1119_v48 = vadd.f32 %v1118_v12, %v3332_v8  ;;  %v1233_v53 = vadd.f32 %v1232_v51, %v3333_v58  ;;  %v1117_v11 = vadd.f32 %v1116_v20, %v3334_v57  ;;  %v3336_v12 = vld [vmem:[#allocation27_spill] sm:$0xff]  ;;  %v2335_v6 = vpop.f32.mrf.mxu0 }
 0x18a   : > { %v1756_v50 = vrot.slane %v1755_v25, 1  ;;  %v1519_v54 = vsel %vm1491_vm9, %v1517_v15, %v1518_v23  ;;  %v1523_v62 = vrot.slane %v1241_v60, 2  ;;  %v1126_v1 = vpop.f32.mrf.mxu1  ;;  %v1462_v45 = vadd.f32 %v1413_v16, %v1107_v46  ;;  %v3337_v51 = vld [vmem:[#allocation19_spill] sm:$0xff] }
 0x18b   : > { %v1761_v2 = vrot.slane %v1760_v43, 4  ;;  %v1571_v47 = vadd.f32 %v1519_v54, %v3158_v38  ;;  %v1520_v52 = vrot.slane %v1233_v53, 2  ;;  %v1123_v39 = vadd.f32 %v1122_v56, %v3335_v61  ;;  %v1248_v44 = vpop.f32.mrf.mxu0 }
 0x18c   : > { %v1757_v34 = vmax.f32 %v1755_v25, %v1756_v50  ;;  %v1414_v0 = vrot.slane %v1119_v48, 1  ;;  %v1125_v18 = vadd.f32 %v1124_v30, %v3336_v12  ;;  %v1246_v32 = vadd.f32 %v1245_v31, %v3337_v51  ;;  %v1128_v40 = vpop.f32.mrf.mxu1  ;;  %v3341_v25 = vld [vmem:[#allocation29_spill] sm:$0xff] }
 0x18d   : > { %v1762_v49 = vmax.f32 %v1760_v43, %v1761_v2  ;;  %v1127_v42 = vadd.f32 %v1126_v1, %v3338_v5  ;;  %v1524_v20 = vsel %vm1491_vm9, %v1522_v21, %v1523_v62  ;;  %v1521_v3 = vsel %vm1491_vm9, %v1518_v23, %v1520_v52  ;;  %v3342_v23 = vld [vmem:[#allocation21_spill] sm:$0xff] }
 0x18e   : > { %v1573_v4 = vadd.f32 %v1520_v52, %v3176_v41  ;;  %v1572_v38 = vadd.f32 %v1521_v3, %v3181_v17  ;;  %v1415_v13 = vrot.slane %v1125_v18, 1  ;;  %v1525_v19 = vrot.slane %v1246_v32, 2 }
 0x18f   : > { %v1763_v7 = vrot.slane %v1762_v49, 2  ;;  %v1807_v56 = vsel %vm1806_vm10, %v1757_v34, %v1805_v14  ;;  %v1254_v59 = vadd.f32 %v2334_v33, %v3339_v28  ;;  %v1257_v41 = vadd.f32 %v2335_v6, %v3340_v9 }
 0x190   : > { %v1714_v27 = vsel %vm1696_vm8, %v1573_v4, -inf  ;;  %v1767_v46 = vmax.f32 %v1571_v47, %v1572_v38  ;;  %v1526_v24 = vsel %vm1491_vm9, %v1523_v62, %v1525_v19  ;;  %v1574_v29 = vadd.f32 %v1524_v20, %v1461_v22 }
 0x191   : > { %v1764_v10 = vmax.f32 %v1762_v49, %v1763_v7  ;;  %v1768_v37 = vsel %vm1491_vm9, %v1714_v27, -inf  ;;  %v1575_v36 = vadd.f32 %v1526_v24, %v1462_v45  ;;  %v1576_v63 = vadd.f32 %v1525_v19, %v1463_v55 }
 0x192   : > { %v1769_v14 = vmax.f32 %v1767_v46, %v1768_v37  ;;  %v1416_v30 = vsel %vm1378_vm4, %v1414_v0, %v1415_v13  ;;  %v1129_v15 = vadd.f32 %v1128_v40, %v3341_v25  ;;  %v1249_v35 = vadd.f32 %v1248_v44, %v3342_v23  ;;  %v2232_v46 = vld [vmem:[%s3303_s6] ss:$0 sm:$0xff] }
 0x193   : > { %v1765_v17 = vrot.slane %v1764_v10, 1  ;;  %v1717_v33 = vsel %vm1696_vm8, %v1576_v63, -inf  ;;  %v1776_v16 = vmax.f32 %v1574_v29, %v1575_v36  ;;  %v1530_v21 = vrot.slane %v1257_v41, 2 }
 0x194   : > { %v1770_v60 = vrot.slane %v1769_v14, 4  ;;  %v1777_v50 = vsel %vm1491_vm9, %v1717_v33, -inf  ;;  %v1417_v8 = vrot.slane %v1129_v15, 1  ;;  %v1528_v22 = vrot.slane %v1254_v59, 2 }
 0x195   : > { %v1766_v43 = vmax.f32 %v1764_v10, %v1765_v17  ;;  %v1778_v48 = vmax.f32 %v1776_v16, %v1777_v50  ;;  %v1527_v58 = vrot.slane %v1249_v35, 2  ;;  %v1464_v54 = vadd.f32 %v1416_v30, %v1117_v11  ;;  %v2231_v10 = vld [vmem:[%s3301_s4] ss:$0 sm:$0xff] }
 0x196   : > { %v1771_v53 = vmax.f32 %v1769_v14, %v1770_v60  ;;  %v1418_v31 = vsel %vm1378_vm4, %v1415_v13, %v1417_v8  ;;  %v1466_v2 = vadd.f32 %v1417_v8, %v1127_v42  ;;  %v1531_v45 = vsel %vm1491_vm9, %v1528_v22, %v1530_v21 }
 0x197   : > { %v1809_v55 = vsel %vm1808_vm11, %v1766_v43, %v1807_v56  ;;  %v1779_v57 = vrot.slane %v1778_v48, 4  ;;  %v1465_v62 = vadd.f32 %v1418_v31, %v1123_v39  ;;  %v1529_v1 = vsel %vm1491_vm9, %v1527_v58, %v1528_v22 }
 0x198   : > { %v1772_v34 = vrot.slane %v1771_v53, 2  ;;  %v1579_v49 = vadd.f32 %v1530_v21, %v1466_v2  ;;  %v1577_v61 = vadd.f32 %v1529_v1, %v1464_v54 }
 0x199   : > { %v1780_v47 = vmax.f32 %v1778_v48, %v1779_v57  ;;  %v1578_v52 = vadd.f32 %v1531_v45, %v1465_v62 }
 0x19a   : > { %v1773_v0 = vmax.f32 %v1771_v53, %v1772_v34  ;;  %v1720_v12 = vsel %vm1696_vm8, %v1579_v49, -inf }
 0x19b   : > { %v1781_v18 = vrot.slane %v1780_v47, 2  ;;  %v1786_v51 = vsel %vm1491_vm9, %v1720_v12, -inf  ;;  %v1785_v32 = vmax.f32 %v1577_v61, %v1578_v52 }
 0x19c   : > { %v1774_v11 = vrot.slane %v1773_v0, 1 }
 0x19d   : > { %v1782_v5 = vmax.f32 %v1780_v47, %v1781_v18  ;;  %v1787_v39 = vmax.f32 %v1785_v32, %v1786_v51 }
 0x19e   : > { %v1775_v42 = vmax.f32 %v1773_v0, %v1774_v11 }
 0x19f   : > { %v1783_v6 = vrot.slane %v1782_v5, 1  ;;  %v1788_v7 = vrot.slane %v1787_v39, 4 }
 0x1a0   : > { %v1811_v20 = vsel %vm1810_vm12, %v1775_v42, %v1809_v55 }
 0x1a1   : > { %v1784_v3 = vmax.f32 %v1782_v5, %v1783_v6  ;;  %v1789_v4 = vmax.f32 %v1787_v39, %v1788_v7 }
 0x1a3   : > { %v1813_v38 = vsel %vm1812_vm13, %v1784_v3, %v1811_v20  ;;  %v1790_v13 = vrot.slane %v1789_v4, 2 }
 0x1a5   : > { %v1791_v19 = vmax.f32 %v1789_v4, %v1790_v13 }
 0x1a7   : > { %v1792_v26 = vrot.slane %v1791_v19, 1 }
 0x1a9   : > { %v1793_v56 = vmax.f32 %v1791_v19, %v1792_v26 }
 0x1ab   : > { %v1815_v27 = vsel %vm1814_vm5, %v1793_v56, %v1813_v38 }
 0x1ac   : > { %v1887_v28 = vadd.f32 %v2231_v10, %v1815_v27 }
 0x1ae   : > { %v1888_v59 = vmax.f32 %v1887_v28, 0.0 }
 0x1b0   : > { %v1889_v40 = vpack.c.bf16 %v1888_v59, %v1888_v59 }
 0x1b2   : > { %2353 = vmatmul.mubr.bf16.vlgmr.msra.gmra.mxu0 %v1889_v40 }
 0x272   : > { %v1995_v37 = vpop.f32.mrf.mxu0 }
 0x273   : > { %v1996_v24 = vadd.f32 %v2232_v46, %v1995_v37 }
 0x274   : > { %v2354_v9 = vpop.f32.mrf.mxu0 }
 0x275   : > { %v2241_v41 = vmul.f32 -1.442695, %v1996_v24 }
 0x276   : > { %v1998_v44 = vpop.f32.mrf.mxu0 }
 0x277   : > { %2483 = vpow2.f32 %v2241_v41 }
 0x278   : > { %v2355_v17 = vpop.f32.mrf.mxu0 }
 0x284   : > { %v2484_v29 = vpop.eup %2483 }
 0x285   : > { %v2004_v36 = vadd.f32 1.0, %v2484_v29 }
 0x287   : > { %2485 = vrcp.f32 %v2004_v36 }
 0x294   : > { %v2486_v63 = vpop.eup %2485 }
 0x295   : > { %2007 = vst [vmem:[%s356_s16] sm:$0xff] %v2486_v63 }
 0x296   : > { %2552 = shalt.err (!%p2549_p9)
}
 0x297   : > { %s2553_s15 = scalar_lea.hbm %s3257_s10, 128  ;;  %s2557_s22 = scalar_lea.hbm %s3304_s7, 256 }
 0x298   : > { %p2554_p12 = scmp.ne.s32.totalorder %s3257_s10, %s2553_s15  ;;  %p2558_p5 = scmp.lt.s32.totalorder %s3257_s10, %s3304_s7 }
 0x299   : > { %p2559_p3 = scmp.lt.s32.totalorder %s2557_s22, %s2553_s15 }
 0x29a   : > { %p2555_p1 = pnand %p2554_p12, %p3343_p10 }
 0x29b   : > { %p2560_p4 = por %p2559_p3, %p2558_p5 }
 0x29c   : > { %p2556_p2 = pneg %p2555_p1 }
 0x29e   : > { %p2561_p8 = pnand %p2560_p4, %p2556_p2 }
 0x2a0   : > { %2564 = shalt.err (!%p2561_p8)
}
 0x2a1   : > { %2366 = dma.vmem_to_hbm [thread:$0]  (%p3343_p10), %s2023_s23, 128, %s3257_s10, %s2009_s12  }
 0x2a2 PF: > { %p2383_p11 = scmp.ge.s32.totalorder %s2623_s29, 2  ;;  %s2034_s8 = sand.u32 1, %s2603_s24  }
 0x2a3   : > { %p3344_p13 = scmp.ne.s32.totalorder %s3307_s13, 0  ;;  %s2035_s17 = scalar_lea.sflag [#allocation7], %s2034_s8 }
 0x2a5   : > { %p2376_p0 = pnand %p2383_p11, %p3344_p13 }
 0x2a7   : > { %p2377_p6 = pneg %p2376_p0 }
 0x2a9   : > { %2598 = dma.done.wait (%p2377_p6), %s2035_s17, 128  }
 0x2aa   : > { %2600 = vsyncadd (%p2377_p6), %s2035_s17, 4294967168  ;;  %s22_s29 = sadd.s32 1, %s2623_s29   ;;  %s3345_s24 = smov %s2607_s25 }
 0x2ab   : > { %p19_p7 = scmp.ge.s32.totalorder %s22_s29, 4   ;;  %s3346_s25 = smov %s2611_s26 }
 0x2ac   : > { %s3347_s26 = smov %s2726_s14  ;;  %s3348_s27 = smov %s2619_s28 }
 0x2ad   : > { %s3349_s28 = smov %s3351_s9  ;;  %21 = sbr.rel (!%p19_p7) target bundleno = 6 (0x6), region = 115 }
 0x2b2   :  { %2040 = vsyncpa [#allocation6], 1 }
 0x2b3   :  { %2042 = vsyncpa [#allocation6 + $0x1], 1 }
 0x2b4   :  { %2043 = vsyncpa [#allocation9], 1 }
 0x2b5   :  { %2044 = vsyncpa [#allocation7], 1 }
 0x2b6   :  { %2046 = vsyncpa [#allocation7 + $0x1], 1 }

</bundles_post_ra>
